<compile_context>
chip_gen: v7x
topology: tpu7x:2x2x1
jax: 0.10.0
libtpu: 0.0.40
codegen_flags: <defaults>
</compile_context>

<pallas_src>
import functools

import jax
import jax.numpy as jnp
import numpy as np
from jax import lax
from jax.experimental import pallas as pl
from jax.experimental.pallas import tpu as pltpu


# ----------------------------- Pallas kernel ------------------------------ #

def _residual_se_kernel(
    x_ref,                     # (B, C, L)  input block, NCL
    s1_ref, b1_ref,            # (1, C)     folded BN1 scale / shift
    w1_ref,                    # (3C, C)    conv1 weights, taps folded along K (bf16)
    s2_ref, b2_ref,            # (1, C)     folded BN2 scale / shift
    w2_ref,                    # (3C, C)    conv2 weights (bf16)
    wse1_ref, bse1_ref,        # (C, CP), (1, CP)   SE squeeze fc (Cr padded to CP lanes)
    wse2_ref, bse2_ref,        # (CP, C), (1, C)    SE excite fc
    o_ref,                     # (B, C, L)  output block, NCL
    *, B, L, C, dilation,
):
    f32, bf16 = jnp.float32, jnp.bfloat16
    R = B * L

    # ---- on-chip NCL -> rows: per-element (C, L) -> (L, C) transpose (XLU) ----
    x_rows = jnp.concatenate([x_ref[b].T for b in range(B)], axis=0)      # (R, C) f32

    # Within-element position along L, for conv boundary masking on the fused rows.
    pos = lax.broadcasted_iota(jnp.int32, (B, L, C), 1).reshape(R, C)

    # ---- BN1 (inference, folded) + ReLU ----
    act = jnp.maximum(x_rows * s1_ref[...] + b1_ref[...], 0.0)            # (R, C) f32

    def conv3(a, w_ref, d):
        # Shifted copies via XLU roll + boundary mask == per-element zero padding.
        left = jnp.where(pos >= d,                                         # a[r-d]
                         pltpu.roll(a, shift=d % R, axis=0), 0.0)
        right = jnp.where(pos < L - d,                                     # a[r+d]
                          pltpu.roll(a, shift=(R - d) % R, axis=0), 0.0)
        # Lane-axis concat of 128-wide pieces is layout-free -> one K=3C matmul.
        im2col = jnp.concatenate([left, a, right], axis=1).astype(bf16)    # (R, 3C)
        return jnp.dot(im2col, w_ref[...], preferred_element_type=f32)     # (R, C) f32

    # ---- conv1 (k=3, dilation=d, padding=d) ----
    y1 = conv3(act, w1_ref, dilation)

    # ---- BN2 (inference, folded) + ReLU ----
    a2 = jnp.maximum(y1 * s2_ref[...] + b2_ref[...], 0.0)

    # ---- conv2 (k=3, padding=1) ----
    y2 = conv3(a2, w2_ref, 1)

    # ---- SeBlock: global avg pool over L, fc -> relu -> fc -> sigmoid ----
    y2_3d = y2.reshape(B, L, C)
    pooled = jnp.mean(y2_3d, axis=1)                                       # (B, C) f32
    h = jnp.maximum(
        jnp.dot(pooled.astype(bf16), wse1_ref[...], preferred_element_type=f32)
        + bse1_ref[...],
        0.0,
    )                                                                      # (B, CP)
    gate = jax.nn.sigmoid(
        jnp.dot(h.astype(bf16), wse2_ref[...], preferred_element_type=f32)
        + bse2_ref[...]
    )                                                                      # (B, C)

    # ---- scale + residual, then back to NCL per element ----
    out_3d = y2_3d * gate[:, None, :] + x_rows.reshape(B, L, C)            # (B, L, C) f32
    for b in range(B):
        o_ref[b] = out_3d[b].T                                             # (C, L)


# ------------------------------- Wrapper ----------------------------------- #

def _pick_batch_tile(n, length, *, target_rows=512):
    """Largest divisor of n with b*length around target_rows, keeping >= 2 grid
    blocks when n allows (so both v7x TensorCores get work) and staying far
    below the v7x 64 MiB VMEM budget."""
    want = max(1, target_rows // max(length, 1))
    if n >= 2:
        want = min(want, n // 2)
    want = max(1, min(want, n))
    for b in range(want, 0, -1):
        if n % b == 0:
            return b
    return 1


def residual_se_block(x_ncl, params, *, dilation=1):
    """x_ncl: (N, C, L) float32 (PyTorch NCL convention). Returns (N, C, L)."""
    N, C, L = x_ncl.shape
    assert C == 128, "ResidualSEBlock hard-codes SeBlock(128) and an identity skip"
    assert L % 8 == 0, "length must be a multiple of 8 for the fused-row layout"
    Cr = C // 16
    CP = 128   # pad the SE bottleneck (Cr=8) to a full lane width (exact: zero pad)

    B = _pick_batch_tile(N, L)
    grid = (N // B,)

    # Constant operands prepared once: conv taps folded along K, bf16 MXU operands.
    bf16 = jnp.bfloat16
    w1_flat = params["w1"].reshape(3 * C, C).astype(bf16)
    w2_flat = params["w2"].reshape(3 * C, C).astype(bf16)
    wse1 = jnp.zeros((C, CP), bf16).at[:, :Cr].set(params["wse1"].astype(bf16))
    bse1 = jnp.zeros((1, CP), jnp.float32).at[:, :Cr].set(params["bse1"])
    wse2 = jnp.zeros((CP, C), bf16).at[:Cr, :].set(params["wse2"].astype(bf16))

    kernel = functools.partial(_residual_se_kernel, B=B, L=L, C=C, dilation=dilation)

    const2 = lambda n: (0, 0)   # constants stay resident across grid steps
    # NOTE: these constant operands could additionally be single-buffered
    # (pipeline_mode=pl.Buffered(1)) to halve their VMEM footprint; at C=128 the
    # headroom is ample even for v7x (64 MiB VMEM), so default buffering is kept.

    out = pl.pallas_call(
        kernel,
        out_shape=jax.ShapeDtypeStruct((N, C, L), jnp.float32),
        grid=grid,
        in_specs=[
            pl.BlockSpec((B, C, L), lambda n: (n, 0, 0)),    # x (NCL block)
            pl.BlockSpec((1, C), const2),                    # bn1 scale
            pl.BlockSpec((1, C), const2),                    # bn1 shift
            pl.BlockSpec((3 * C, C), const2),                # conv1 w (taps folded)
            pl.BlockSpec((1, C), const2),                    # bn2 scale
            pl.BlockSpec((1, C), const2),                    # bn2 shift
            pl.BlockSpec((3 * C, C), const2),                # conv2 w (taps folded)
            pl.BlockSpec((C, CP), const2),                   # se fc1 w (lane padded)
            pl.BlockSpec((1, CP), const2),                   # se fc1 b (lane padded)
            pl.BlockSpec((CP, C), const2),                   # se fc2 w (lane padded)
            pl.BlockSpec((1, C), const2),                    # se fc2 b
        ],
        out_specs=pl.BlockSpec((B, C, L), lambda n: (n, 0, 0)),
        compiler_params=pltpu.CompilerParams(
            dimension_semantics=("parallel",),               # batch tiles across v7x TCs
        ),
    )(
        x_ncl,
        params["s1"], params["b1"], w1_flat,
        params["s2"], params["b2"], w2_flat,
        wse1, bse1, wse2, params["bse2"],
    )
    return out


# -------------------------- Pure-JAX reference ----------------------------- #

def residual_se_block_ref(x_ncl, params, *, dilation=1):
    x = jnp.transpose(x_ncl, (0, 2, 1))                        # (N, L, C)
    act = jnp.maximum(x * params["s1"] + params["b1"], 0.0)
    y1 = lax.conv_general_dilated(
        act, params["w1"], window_strides=(1,),
        padding=[(dilation, dilation)], rhs_dilation=(dilation,),
        dimension_numbers=("NWC", "WIO", "NWC"))
    a2 = jnp.maximum(y1 * params["s2"] + params["b2"], 0.0)
    y2 = lax.conv_general_dilated(
        a2, params["w2"], window_strides=(1,), padding=[(1, 1)],
        dimension_numbers=("NWC", "WIO", "NWC"))
    pooled = jnp.mean(y2, axis=1)                              # (N, C)
    h = jnp.maximum(pooled @ params["wse1"] + params["bse1"], 0.0)
    gate = jax.nn.sigmoid(h @ params["wse2"] + params["bse2"])
    out = y2 * gate[:, None, :] + x
    return jnp.transpose(out, (0, 2, 1))


# ------------------------------ Param init --------------------------------- #

def make_params(key, C):
    Cr = C // 16
    eps = 1e-5
    ks = jax.random.split(key, 12)

    def fold_bn(kg, kb, km, kv):
        gamma = 1.0 + 0.1 * jax.random.normal(kg, (C,), jnp.float32)
        beta = 0.1 * jax.random.normal(kb, (C,), jnp.float32)
        rmean = 0.1 * jax.random.normal(km, (C,), jnp.float32)
        rvar = 1.0 + 0.1 * jax.random.uniform(kv, (C,), jnp.float32)
        scale = gamma / jnp.sqrt(rvar + eps)
        shift = beta - rmean * scale
        return scale[None, :], shift[None, :]

    s1, b1 = fold_bn(ks[0], ks[1], ks[2], ks[3])
    s2, b2 = fold_bn(ks[4], ks[5], ks[6], ks[7])

    # Conv weights in (kernel_tap, in_ch, out_ch) layout.
    w1 = 0.05 * jax.random.normal(ks[8], (3, C, C), jnp.float32)
    w2 = 0.05 * jax.random.normal(ks[9], (3, C, C), jnp.float32)

    wse1 = 0.1 * jax.random.normal(ks[10], (C, Cr), jnp.float32)
    bse1 = jnp.zeros((1, Cr), jnp.float32) + 0.01
    wse2 = 0.1 * jax.random.normal(ks[11], (Cr, C), jnp.float32)
    bse2 = jnp.zeros((1, C), jnp.float32) - 0.01

    return dict(s1=s1, b1=b1, w1=w1, s2=s2, b2=b2, w2=w2,
                wse1=wse1, bse1=bse1, wse2=wse2, bse2=bse2)


# --------------------------------- Main ------------------------------------ #

if __name__ == "__main__":
    key = jax.random.PRNGKey(0)
    kx, kp = jax.random.split(key)

    N, C, L = 8, 128, 16          # PyTorch NCL: (batch, channels, length)
    dilation = 2                  # exercises both the dilated (conv1) and d=1 (conv2) paths

    x = jax.random.normal(kx, (N, C, L), jnp.float32)
    params = make_params(kp, C)

    out = residual_se_block(x, params, dilation=dilation)
    out = jax.block_until_ready(out)

    ref = residual_se_block_ref(x, params, dilation=dilation)
    # bf16 MXU operands (f32 accumulation) -> compare against the f32 reference
    # with a correspondingly looser tolerance.
    np.testing.assert_allclose(np.asarray(out), np.asarray(ref),
                               rtol=2e-2, atol=5e-2)

    print("KERNEL_OK")
</pallas_src>

<mosaic_0001>
module attributes {stable_mosaic.version = 11 : i64} {
  func.func @_residual_se_kernel(%arg0: i32, %arg1: memref<4x128x16xf32, #tpu.memory_space<vmem>>, %arg2: memref<1x128xf32, #tpu.memory_space<vmem>>, %arg3: memref<1x128xf32, #tpu.memory_space<vmem>>, %arg4: memref<384x128xbf16, #tpu.memory_space<vmem>>, %arg5: memref<1x128xf32, #tpu.memory_space<vmem>>, %arg6: memref<1x128xf32, #tpu.memory_space<vmem>>, %arg7: memref<384x128xbf16, #tpu.memory_space<vmem>>, %arg8: memref<128x128xbf16, #tpu.memory_space<vmem>>, %arg9: memref<1x128xf32, #tpu.memory_space<vmem>>, %arg10: memref<128x128xbf16, #tpu.memory_space<vmem>>, %arg11: memref<1x128xf32, #tpu.memory_space<vmem>>, %arg12: memref<4x128x16xf32, #tpu.memory_space<vmem>>) attributes {dimension_semantics = [#tpu.dimension_semantics<parallel>], iteration_bounds = array<i64: 2>, scalar_prefetch = 0 : i64, scratch_operands = 0 : i64, tpu.core_type = #tpu.core_type<tc>, window_params = [{transform_indices = @transform_0, window_bounds = array<i64: 4, 128, 16>}, {pipeline_mode = #tpu.pipeline_mode<synchronous>, transform_indices = @transform_1, window_bounds = array<i64: 1, 128>}, {pipeline_mode = #tpu.pipeline_mode<synchronous>, transform_indices = @transform_2, window_bounds = array<i64: 1, 128>}, {pipeline_mode = #tpu.pipeline_mode<synchronous>, transform_indices = @transform_3, window_bounds = array<i64: 384, 128>}, {pipeline_mode = #tpu.pipeline_mode<synchronous>, transform_indices = @transform_4, window_bounds = array<i64: 1, 128>}, {pipeline_mode = #tpu.pipeline_mode<synchronous>, transform_indices = @transform_5, window_bounds = array<i64: 1, 128>}, {pipeline_mode = #tpu.pipeline_mode<synchronous>, transform_indices = @transform_6, window_bounds = array<i64: 384, 128>}, {pipeline_mode = #tpu.pipeline_mode<synchronous>, transform_indices = @transform_7, window_bounds = array<i64: 128, 128>}, {pipeline_mode = #tpu.pipeline_mode<synchronous>, transform_indices = @transform_8, window_bounds = array<i64: 1, 128>}, {pipeline_mode = #tpu.pipeline_mode<synchronous>, transform_indices = @transform_9, window_bounds = array<i64: 128, 128>}, {pipeline_mode = #tpu.pipeline_mode<synchronous>, transform_indices = @transform_10, window_bounds = array<i64: 1, 128>}, {transform_indices = @transform_11, window_bounds = array<i64: 4, 128, 16>}]} {
    %c0 = arith.constant 0 : index
    %c0_0 = arith.constant 0 : index
    %c0_1 = arith.constant 0 : index
    %0 = vector.load %arg1[%c0, %c0_0, %c0_1] : memref<4x128x16xf32, #tpu.memory_space<vmem>>, vector<1x128x16xf32>
    %1 = vector.shape_cast %0 : vector<1x128x16xf32> to vector<128x16xf32>
    %2 = tpu.transpose %1, [1, 0] : vector<128x16xf32> -> vector<16x128xf32>
    %c1 = arith.constant 1 : index
    %c0_2 = arith.constant 0 : index
    %c0_3 = arith.constant 0 : index
    %3 = vector.load %arg1[%c1, %c0_2, %c0_3] : memref<4x128x16xf32, #tpu.memory_space<vmem>>, vector<1x128x16xf32>
    %4 = vector.shape_cast %3 : vector<1x128x16xf32> to vector<128x16xf32>
    %5 = tpu.transpose %4, [1, 0] : vector<128x16xf32> -> vector<16x128xf32>
    %c2 = arith.constant 2 : index
    %c0_4 = arith.constant 0 : index
    %c0_5 = arith.constant 0 : index
    %6 = vector.load %arg1[%c2, %c0_4, %c0_5] : memref<4x128x16xf32, #tpu.memory_space<vmem>>, vector<1x128x16xf32>
    %7 = vector.shape_cast %6 : vector<1x128x16xf32> to vector<128x16xf32>
    %8 = tpu.transpose %7, [1, 0] : vector<128x16xf32> -> vector<16x128xf32>
    %c3 = arith.constant 3 : index
    %c0_6 = arith.constant 0 : index
    %c0_7 = arith.constant 0 : index
    %9 = vector.load %arg1[%c3, %c0_6, %c0_7] : memref<4x128x16xf32, #tpu.memory_space<vmem>>, vector<1x128x16xf32>
    %10 = vector.shape_cast %9 : vector<1x128x16xf32> to vector<128x16xf32>
    %11 = tpu.transpose %10, [1, 0] : vector<128x16xf32> -> vector<16x128xf32>
    %12 = tpu.concatenate %2, %5, %8, %11 in 0 : vector<16x128xf32>, vector<16x128xf32>, vector<16x128xf32>, vector<16x128xf32> -> vector<64x128xf32>
    %13 = tpu.iota {dimensions = array<i32: 1>} : vector<4x16x128xi32>
    %14 = vector.shape_cast %13 : vector<4x16x128xi32> to vector<64x128xi32>
    %c0_8 = arith.constant 0 : index
    %c0_9 = arith.constant 0 : index
    %15 = vector.load %arg2[%c0_8, %c0_9] : memref<1x128xf32, #tpu.memory_space<vmem>>, vector<1x128xf32>
    %16 = vector.broadcast %15 : vector<1x128xf32> to vector<64x128xf32>
    %17 = arith.mulf %12, %16 : vector<64x128xf32>
    %c0_10 = arith.constant 0 : index
    %c0_11 = arith.constant 0 : index
    %18 = vector.load %arg3[%c0_10, %c0_11] : memref<1x128xf32, #tpu.memory_space<vmem>>, vector<1x128xf32>
    %19 = vector.broadcast %18 : vector<1x128xf32> to vector<64x128xf32>
    %20 = arith.addf %17, %19 : vector<64x128xf32>
    %cst = arith.constant 0.000000e+00 : f32
    %21 = vector.broadcast %cst : f32 to vector<64x128xf32>
    %22 = arith.maximumf %20, %21 : vector<64x128xf32>
    %c2_i32 = arith.constant 2 : i32
    %23 = vector.broadcast %c2_i32 : i32 to vector<64x128xi32>
    %24 = arith.cmpi sge, %14, %23 : vector<64x128xi32>
    %c2_i32_12 = arith.constant 2 : i32
    %25 = tpu.dynamic_rotate %22 by %c2_i32_12 dim 0 : vector<64x128xf32>, i32 -> vector<64x128xf32>
    %cst_13 = arith.constant 0.000000e+00 : f32
    %26 = vector.broadcast %cst_13 : f32 to vector<64x128xf32>
    %27 = arith.select %24, %25, %26 : vector<64x128xi1>, vector<64x128xf32>
    %c14_i32 = arith.constant 14 : i32
    %28 = vector.broadcast %c14_i32 : i32 to vector<64x128xi32>
    %29 = arith.cmpi slt, %14, %28 : vector<64x128xi32>
    %c62_i32 = arith.constant 62 : i32
    %30 = tpu.dynamic_rotate %22 by %c62_i32 dim 0 : vector<64x128xf32>, i32 -> vector<64x128xf32>
    %cst_14 = arith.constant 0.000000e+00 : f32
    %31 = vector.broadcast %cst_14 : f32 to vector<64x128xf32>
    %32 = arith.select %29, %30, %31 : vector<64x128xi1>, vector<64x128xf32>
    %33 = tpu.concatenate %27, %22, %32 in 1 : vector<64x128xf32>, vector<64x128xf32>, vector<64x128xf32> -> vector<64x384xf32>
    %34 = arith.truncf %33 : vector<64x384xf32> to vector<64x384xbf16>
    %c0_15 = arith.constant 0 : index
    %c0_16 = arith.constant 0 : index
    %35 = vector.load %arg4[%c0_15, %c0_16] : memref<384x128xbf16, #tpu.memory_space<vmem>>, vector<384x128xbf16>
    %cst_17 = arith.constant dense<0.000000e+00> : vector<64x128xf32>
    %36 = tpu.matmul %34, %35, %cst_17 {dimension_numbers = #tpu.dot_dimension_numbers<[1], [0], [0], [1], [0, 0, 1, 1], [], []>} : vector<64x384xbf16>, vector<384x128xbf16>, vector<64x128xf32> -> vector<64x128xf32>
    %c0_18 = arith.constant 0 : index
    %c0_19 = arith.constant 0 : index
    %37 = vector.load %arg5[%c0_18, %c0_19] : memref<1x128xf32, #tpu.memory_space<vmem>>, vector<1x128xf32>
    %38 = vector.broadcast %37 : vector<1x128xf32> to vector<64x128xf32>
    %39 = arith.mulf %36, %38 : vector<64x128xf32>
    %c0_20 = arith.constant 0 : index
    %c0_21 = arith.constant 0 : index
    %40 = vector.load %arg6[%c0_20, %c0_21] : memref<1x128xf32, #tpu.memory_space<vmem>>, vector<1x128xf32>
    %41 = vector.broadcast %40 : vector<1x128xf32> to vector<64x128xf32>
    %42 = arith.addf %39, %41 : vector<64x128xf32>
    %cst_22 = arith.constant 0.000000e+00 : f32
    %43 = vector.broadcast %cst_22 : f32 to vector<64x128xf32>
    %44 = arith.maximumf %42, %43 : vector<64x128xf32>
    %c1_i32 = arith.constant 1 : i32
    %45 = vector.broadcast %c1_i32 : i32 to vector<64x128xi32>
    %46 = arith.cmpi sge, %14, %45 : vector<64x128xi32>
    %c1_i32_23 = arith.constant 1 : i32
    %47 = tpu.dynamic_rotate %44 by %c1_i32_23 dim 0 : vector<64x128xf32>, i32 -> vector<64x128xf32>
    %cst_24 = arith.constant 0.000000e+00 : f32
    %48 = vector.broadcast %cst_24 : f32 to vector<64x128xf32>
    %49 = arith.select %46, %47, %48 : vector<64x128xi1>, vector<64x128xf32>
    %c15_i32 = arith.constant 15 : i32
    %50 = vector.broadcast %c15_i32 : i32 to vector<64x128xi32>
    %51 = arith.cmpi slt, %14, %50 : vector<64x128xi32>
    %c63_i32 = arith.constant 63 : i32
    %52 = tpu.dynamic_rotate %44 by %c63_i32 dim 0 : vector<64x128xf32>, i32 -> vector<64x128xf32>
    %cst_25 = arith.constant 0.000000e+00 : f32
    %53 = vector.broadcast %cst_25 : f32 to vector<64x128xf32>
    %54 = arith.select %51, %52, %53 : vector<64x128xi1>, vector<64x128xf32>
    %55 = tpu.concatenate %49, %44, %54 in 1 : vector<64x128xf32>, vector<64x128xf32>, vector<64x128xf32> -> vector<64x384xf32>
    %56 = arith.truncf %55 : vector<64x384xf32> to vector<64x384xbf16>
    %c0_26 = arith.constant 0 : index
    %c0_27 = arith.constant 0 : index
    %57 = vector.load %arg7[%c0_26, %c0_27] : memref<384x128xbf16, #tpu.memory_space<vmem>>, vector<384x128xbf16>
    %cst_28 = arith.constant dense<0.000000e+00> : vector<64x128xf32>
    %58 = tpu.matmul %56, %57, %cst_28 {dimension_numbers = #tpu.dot_dimension_numbers<[1], [0], [0], [1], [0, 0, 1, 1], [], []>} : vector<64x384xbf16>, vector<384x128xbf16>, vector<64x128xf32> -> vector<64x128xf32>
    %59 = vector.shape_cast %58 : vector<64x128xf32> to vector<4x16x128xf32>
    %cst_29 = arith.constant dense<0.000000e+00> : vector<4x128xf32>
    %60 = vector.multi_reduction <add>, %59, %cst_29 [1] : vector<4x16x128xf32> to vector<4x128xf32>
    %cst_30 = arith.constant 1.600000e+01 : f32
    %61 = vector.broadcast %cst_30 : f32 to vector<4x128xf32>
    %62 = arith.divf %60, %61 : vector<4x128xf32>
    %63 = arith.truncf %62 : vector<4x128xf32> to vector<4x128xbf16>
    %c0_31 = arith.constant 0 : index
    %c0_32 = arith.constant 0 : index
    %64 = vector.load %arg8[%c0_31, %c0_32] : memref<128x128xbf16, #tpu.memory_space<vmem>>, vector<128x128xbf16>
    %cst_33 = arith.constant dense<0.000000e+00> : vector<4x128xf32>
    %65 = tpu.matmul %63, %64, %cst_33 {dimension_numbers = #tpu.dot_dimension_numbers<[1], [0], [0], [1], [0, 0, 1, 1], [], []>} : vector<4x128xbf16>, vector<128x128xbf16>, vector<4x128xf32> -> vector<4x128xf32>
    %c0_34 = arith.constant 0 : index
    %c0_35 = arith.constant 0 : index
    %66 = vector.load %arg9[%c0_34, %c0_35] : memref<1x128xf32, #tpu.memory_space<vmem>>, vector<1x128xf32>
    %67 = vector.broadcast %66 : vector<1x128xf32> to vector<4x128xf32>
    %68 = arith.addf %65, %67 : vector<4x128xf32>
    %cst_36 = arith.constant 0.000000e+00 : f32
    %69 = vector.broadcast %cst_36 : f32 to vector<4x128xf32>
    %70 = arith.maximumf %68, %69 : vector<4x128xf32>
    %71 = arith.truncf %70 : vector<4x128xf32> to vector<4x128xbf16>
    %c0_37 = arith.constant 0 : index
    %c0_38 = arith.constant 0 : index
    %72 = vector.load %arg10[%c0_37, %c0_38] : memref<128x128xbf16, #tpu.memory_space<vmem>>, vector<128x128xbf16>
    %cst_39 = arith.constant dense<0.000000e+00> : vector<4x128xf32>
    %73 = tpu.matmul %71, %72, %cst_39 {dimension_numbers = #tpu.dot_dimension_numbers<[1], [0], [0], [1], [0, 0, 1, 1], [], []>} : vector<4x128xbf16>, vector<128x128xbf16>, vector<4x128xf32> -> vector<4x128xf32>
    %c0_40 = arith.constant 0 : index
    %c0_41 = arith.constant 0 : index
    %74 = vector.load %arg11[%c0_40, %c0_41] : memref<1x128xf32, #tpu.memory_space<vmem>>, vector<1x128xf32>
    %75 = vector.broadcast %74 : vector<1x128xf32> to vector<4x128xf32>
    %76 = arith.addf %73, %75 : vector<4x128xf32>
    %77 = arith.negf %76 : vector<4x128xf32>
    %78 = math.exp %77 : vector<4x128xf32>
    %cst_42 = arith.constant 1.000000e+00 : f32
    %79 = vector.broadcast %cst_42 : f32 to vector<4x128xf32>
    %80 = arith.addf %79, %78 : vector<4x128xf32>
    %81 = arith.divf %79, %80 : vector<4x128xf32>
    %82 = vector.shape_cast %81 : vector<4x128xf32> to vector<4x1x128xf32>
    %83 = vector.broadcast %82 : vector<4x1x128xf32> to vector<4x16x128xf32>
    %84 = arith.mulf %59, %83 : vector<4x16x128xf32>
    %85 = vector.shape_cast %12 : vector<64x128xf32> to vector<4x16x128xf32>
    %86 = arith.addf %84, %85 : vector<4x16x128xf32>
    %87 = vector.extract_strided_slice %86 {offsets = [0, 0, 0], sizes = [1, 16, 128], strides = [1, 1, 1]} : vector<4x16x128xf32> to vector<1x16x128xf32>
    %88 = vector.shape_cast %87 : vector<1x16x128xf32> to vector<16x128xf32>
    %89 = tpu.transpose %88, [1, 0] : vector<16x128xf32> -> vector<128x16xf32>
    %c0_43 = arith.constant 0 : index
    %c0_44 = arith.constant 0 : index
    %c0_45 = arith.constant 0 : index
    %90 = vector.load %arg12[%c0_43, %c0_44, %c0_45] : memref<4x128x16xf32, #tpu.memory_space<vmem>>, vector<1x128x16xf32>
    %91 = vector.shape_cast %90 : vector<1x128x16xf32> to vector<128x16xf32>
    %92 = vector.shape_cast %89 : vector<128x16xf32> to vector<1x128x16xf32>
    tpu.vector_store %arg12[%c0_43, %c0_44, %c0_45], %92 {strides = array<i32>} : memref<4x128x16xf32, #tpu.memory_space<vmem>>, vector<1x128x16xf32>,
    %93 = vector.extract_strided_slice %86 {offsets = [1, 0, 0], sizes = [1, 16, 128], strides = [1, 1, 1]} : vector<4x16x128xf32> to vector<1x16x128xf32>
    %94 = vector.shape_cast %93 : vector<1x16x128xf32> to vector<16x128xf32>
    %95 = tpu.transpose %94, [1, 0] : vector<16x128xf32> -> vector<128x16xf32>
    %c1_46 = arith.constant 1 : index
    %c0_47 = arith.constant 0 : index
    %c0_48 = arith.constant 0 : index
    %96 = vector.load %arg12[%c1_46, %c0_47, %c0_48] : memref<4x128x16xf32, #tpu.memory_space<vmem>>, vector<1x128x16xf32>
    %97 = vector.shape_cast %96 : vector<1x128x16xf32> to vector<128x16xf32>
    %98 = vector.shape_cast %95 : vector<128x16xf32> to vector<1x128x16xf32>
    tpu.vector_store %arg12[%c1_46, %c0_47, %c0_48], %98 {strides = array<i32>} : memref<4x128x16xf32, #tpu.memory_space<vmem>>, vector<1x128x16xf32>,
    %99 = vector.extract_strided_slice %86 {offsets = [2, 0, 0], sizes = [1, 16, 128], strides = [1, 1, 1]} : vector<4x16x128xf32> to vector<1x16x128xf32>
    %100 = vector.shape_cast %99 : vector<1x16x128xf32> to vector<16x128xf32>
    %101 = tpu.transpose %100, [1, 0] : vector<16x128xf32> -> vector<128x16xf32>
    %c2_49 = arith.constant 2 : index
    %c0_50 = arith.constant 0 : index
    %c0_51 = arith.constant 0 : index
    %102 = vector.load %arg12[%c2_49, %c0_50, %c0_51] : memref<4x128x16xf32, #tpu.memory_space<vmem>>, vector<1x128x16xf32>
    %103 = vector.shape_cast %102 : vector<1x128x16xf32> to vector<128x16xf32>
    %104 = vector.shape_cast %101 : vector<128x16xf32> to vector<1x128x16xf32>
    tpu.vector_store %arg12[%c2_49, %c0_50, %c0_51], %104 {strides = array<i32>} : memref<4x128x16xf32, #tpu.memory_space<vmem>>, vector<1x128x16xf32>,
    %105 = vector.extract_strided_slice %86 {offsets = [3, 0, 0], sizes = [1, 16, 128], strides = [1, 1, 1]} : vector<4x16x128xf32> to vector<1x16x128xf32>
    %106 = vector.shape_cast %105 : vector<1x16x128xf32> to vector<16x128xf32>
    %107 = tpu.transpose %106, [1, 0] : vector<16x128xf32> -> vector<128x16xf32>
    %c3_52 = arith.constant 3 : index
    %c0_53 = arith.constant 0 : index
    %c0_54 = arith.constant 0 : index
    %108 = vector.load %arg12[%c3_52, %c0_53, %c0_54] : memref<4x128x16xf32, #tpu.memory_space<vmem>>, vector<1x128x16xf32>
    %109 = vector.shape_cast %108 : vector<1x128x16xf32> to vector<128x16xf32>
    %110 = vector.shape_cast %107 : vector<128x16xf32> to vector<1x128x16xf32>
    tpu.vector_store %arg12[%c3_52, %c0_53, %c0_54], %110 {strides = array<i32>} : memref<4x128x16xf32, #tpu.memory_space<vmem>>, vector<1x128x16xf32>,
    return
  }
  func.func @transform_0(%arg0: i32) -> (i32, i32, i32) {
    %c0_i32 = arith.constant 0 : i32
    %c0_i32_0 = arith.constant 0 : i32
    %c0_i32_1 = arith.constant 0 : i32
    return %arg0, %c0_i32, %c0_i32_0 : i32, i32, i32
  }
  func.func @transform_1(%arg0: i32) -> (i32, i32) {
    %c0_i32 = arith.constant 0 : i32
    %c0_i32_0 = arith.constant 0 : i32
    %c0_i32_1 = arith.constant 0 : i32
    return %c0_i32, %c0_i32_0 : i32, i32
  }
  func.func @transform_2(%arg0: i32) -> (i32, i32) {
    %c0_i32 = arith.constant 0 : i32
    %c0_i32_0 = arith.constant 0 : i32
    %c0_i32_1 = arith.constant 0 : i32
    return %c0_i32, %c0_i32_0 : i32, i32
  }
  func.func @transform_3(%arg0: i32) -> (i32, i32) {
    %c0_i32 = arith.constant 0 : i32
    %c0_i32_0 = arith.constant 0 : i32
    %c0_i32_1 = arith.constant 0 : i32
    return %c0_i32, %c0_i32_0 : i32, i32
  }
  func.func @transform_4(%arg0: i32) -> (i32, i32) {
    %c0_i32 = arith.constant 0 : i32
    %c0_i32_0 = arith.constant 0 : i32
    %c0_i32_1 = arith.constant 0 : i32
    return %c0_i32, %c0_i32_0 : i32, i32
  }
  func.func @transform_5(%arg0: i32) -> (i32, i32) {
    %c0_i32 = arith.constant 0 : i32
    %c0_i32_0 = arith.constant 0 : i32
    %c0_i32_1 = arith.constant 0 : i32
    return %c0_i32, %c0_i32_0 : i32, i32
  }
  func.func @transform_6(%arg0: i32) -> (i32, i32) {
    %c0_i32 = arith.constant 0 : i32
    %c0_i32_0 = arith.constant 0 : i32
    %c0_i32_1 = arith.constant 0 : i32
    return %c0_i32, %c0_i32_0 : i32, i32
  }
  func.func @transform_7(%arg0: i32) -> (i32, i32) {
    %c0_i32 = arith.constant 0 : i32
    %c0_i32_0 = arith.constant 0 : i32
    %c0_i32_1 = arith.constant 0 : i32
    return %c0_i32, %c0_i32_0 : i32, i32
  }
  func.func @transform_8(%arg0: i32) -> (i32, i32) {
    %c0_i32 = arith.constant 0 : i32
    %c0_i32_0 = arith.constant 0 : i32
    %c0_i32_1 = arith.constant 0 : i32
    return %c0_i32, %c0_i32_0 : i32, i32
  }
  func.func @transform_9(%arg0: i32) -> (i32, i32) {
    %c0_i32 = arith.constant 0 : i32
    %c0_i32_0 = arith.constant 0 : i32
    %c0_i32_1 = arith.constant 0 : i32
    return %c0_i32, %c0_i32_0 : i32, i32
  }
  func.func @transform_10(%arg0: i32) -> (i32, i32) {
    %c0_i32 = arith.constant 0 : i32
    %c0_i32_0 = arith.constant 0 : i32
    %c0_i32_1 = arith.constant 0 : i32
    return %c0_i32, %c0_i32_0 : i32, i32
  }
  func.func @transform_11(%arg0: i32) -> (i32, i32, i32) {
    %c0_i32 = arith.constant 0 : i32
    %c0_i32_0 = arith.constant 0 : i32
    %c0_i32_1 = arith.constant 0 : i32
    return %arg0, %c0_i32, %c0_i32_0 : i32, i32, i32
  }
}

</mosaic_0001>

<bundles_post_ra>
// kernel: tpu_custom_call.1
= control target key start
LH: loop header
LB: loop body
LE: loop exit
PB: predicated region body
PF: predicated region fallthrough
CT: control target
= control target key end

     0   :  { %s2636_s17 = smov 0   ;;  %s3329_s0 = inlined_call_operand.vmem [shape: f32[8,128,16], index: 0, kind: input, shape index: {}]   ;;  %s3330_s1 = inlined_call_operand.vmem [shape: f32[1,128], index: 1, kind: input, shape index: {}]   ;;  %s3331_s2 = inlined_call_operand.vmem [shape: f32[1,128], index: 2, kind: input, shape index: {}]   ;;  %s3332_s3 = inlined_call_operand.vmem [shape: bf16[384,128], index: 3, kind: input, shape index: {}]   ;;  %s3333_s4 = inlined_call_operand.vmem [shape: f32[1,128], index: 4, kind: input, shape index: {}]   ;;  %s3334_s5 = inlined_call_operand.vmem [shape: f32[1,128], index: 5, kind: input, shape index: {}]   ;;  %s3335_s6 = inlined_call_operand.vmem [shape: bf16[384,128], index: 6, kind: input, shape index: {}]   ;;  %s3336_s7 = inlined_call_operand.vmem [shape: bf16[128,128], index: 7, kind: input, shape index: {}]   ;;  %s3337_s8 = inlined_call_operand.vmem [shape: f32[1,128], index: 8, kind: input, shape index: {}]   ;;  %s3338_s9 = inlined_call_operand.vmem [shape: bf16[128,128], index: 9, kind: input, shape index: {}]   ;;  %s3339_s10 = inlined_call_operand.vmem [shape: f32[1,128], index: 10, kind: input, shape index: {}]   ;;  %s3340_s11 = inlined_call_operand.vmem [shape: f32[8,128,16], index: 11, kind: output, shape index: {}]  }
   0x1 LB: > { %s2044_s18 = sadd.s32 4294967295, %s2570_s17   ;;  %p2048_p0 = scmp.ge.s32.totalorder %s2570_s17, 1  ;;  %s2570_s17 = sphi %s2636_s17, %s21_s17  }
   0x2   : > { %p339_p1 = scmp.lt.s32.totalorder %s2570_s17, 3 }
   0x4   : > { %p340_p2 = pnand %p2048_p0, %p339_p1 }
   0x5   : > { %s2049_s19 = sshll.u32 (!%p340_p2), %s2044_s18, 2  ;;  %v2496_v0 = vld [vmem:[%s3332_s3 + $0x40] sm:$0xff] (!%p340_p2)   ;;  %v2498_v2 = vld [vmem:[%s3332_s3 + $0x48] sm:$0xff] (!%p340_p2)   ;;  %v2500_v8 = vld [vmem:[%s3332_s3 + $0x50] sm:$0xff] (!%p340_p2)   ;;  %vm2572_vm2 = vmmov (!%p340_p2), 1   ;;  %vm2574_vm13 = vmmov (!%p340_p2), 0  }
   0x6   : > { %343 = sbr.rel (%p340_p2) target bundleno = 1462 (0x5b6), region = 64  ;;  %p382_p3 = scmp.lt.s32.totalorder (!%p340_p2), %s2049_s19, 7  ;;  %v2497_v1 = vld [vmem:[%s3332_s3] sm:$0xff] (!%p340_p2)   ;;  %2274 = vmatprep.subr.bf16.mxu0 (!%p340_p2), %v2496_v0  ;;  %v2499_v5 = vld [vmem:[%s3332_s3 + $0x8] sm:$0xff] (!%p340_p2)   ;;  %v2501_v9 = vld [vmem:[%s3332_s3 + $0x10] sm:$0xff] (!%p340_p2)   ;;  %vm1514_vm14 = vcmask (!%p340_p2), 1041409  }
   0x7   : > { %2275 = vmatpush3.bf16.msra.mxu0 (!%p340_p2), %v2497_v1  ;;  %v2502_v20 = vld [vmem:[%s3332_s3 + $0x58] sm:$0xff] (!%p340_p2)   ;;  %v2504_v22 = vld [vmem:[%s3332_s3 + $0x80] sm:$0xff] (!%p340_p2)   ;;  %v2507_v27 = vld [vmem:[%s3332_s3 + $0x88] sm:$0xff] (!%p340_p2)   ;;  %vm1516_vm15 = vcmask (!%p340_p2), 1042434  }
   0x8   : > { %2276 = vmatprep.subr.bf16.mxu0 (!%p340_p2), %v2498_v2  ;;  %v2503_v21 = vld [vmem:[%s3332_s3 + $0x18] sm:$0xff] (!%p340_p2)   ;;  %v2505_v25 = vld [vmem:[%s3332_s3 + $0x60] sm:$0xff] (!%p340_p2)   ;;  %2396 = vmatprep.subr.bf16.mxu1 (!%p340_p2), %v2504_v22  ;;  %v2508_v30 = vld [vmem:[%s3332_s3 + $0x68] sm:$0xff] (!%p340_p2)  }
   0x9   : > { %v2506_v26 = vld [vmem:[%s3332_s3 + $0x20] sm:$0xff] (!%p340_p2)   ;;  %2397 = vmatpush3.bf16.msra.mxu1 (!%p340_p2), %v2504_v22  ;;  %v2509_v31 = vld [vmem:[%s3332_s3 + $0x28] sm:$0xff] (!%p340_p2)   ;;  %v2510_v32 = vld [vmem:[%s3332_s3 + $0x90] sm:$0xff] (!%p340_p2)  }
   0xa   : > { %2398 = vmatprep.subr.bf16.mxu1 (!%p340_p2), %v2507_v27  ;;  %v2511_v35 = vld [vmem:[%s3332_s3 + $0x70] sm:$0xff] (!%p340_p2)   ;;  %v2513_v37 = vld [vmem:[%s3332_s3 + $0x98] sm:$0xff] (!%p340_p2)   ;;  %v2516_v42 = vld [vmem:[%s3332_s3 + $0xa0] sm:$0xff] (!%p340_p2)  }
   0xb   : > { %2277 = vmatpush3.bf16.msra.mxu0 (!%p340_p2), %v2499_v5  ;;  %v2512_v36 = vld [vmem:[%s3332_s3 + $0x30] sm:$0xff] (!%p340_p2)   ;;  %v2514_v38 = vld [vmem:[%s3332_s3 + $0x78] sm:$0xff] (!%p340_p2)   ;;  %v2517_v57 = vld [vmem:[%s3332_s3 + $0xa8] sm:$0xff] (!%p340_p2)  }
   0xc   : > { %2278 = vmatprep.subr.bf16.mxu0 (!%p340_p2), %v2500_v8  ;;  %v2515_v41 = vld [vmem:[%s3332_s3 + $0x38] sm:$0xff] (!%p340_p2)   ;;  %v2518_v60 = vld [vmem:[%s3332_s3 + $0xb0] sm:$0xff] (!%p340_p2)  }
   0xd   : > { %s3348_s19 = smov (!%p382_p3, %s2049_s19), 7  ;;  %2399 = vmatpush3.bf16.msra.mxu1 %v2507_v27  ;;  %v2519_v63 = vld [vmem:[%s3332_s3 + $0xb8] sm:$0xff]  }
   0xe   : > { %s2272_s24 = sshll.u32 %s3348_s19, 7  ;;  %2400 = vmatprep.subr.bf16.mxu1 %v2510_v32 }
   0xf   : > { %s2661_s29 = scalar_lea.vmem %s3329_s0, %s2272_s24  ;;  %2279 = vmatpush3.bf16.msra.mxu0 %v2501_v9  ;;  %s3196_s23 = scalar_lea.vmem %s3340_s11, %s2272_s24 }
  0x10   : > { %v2087_v3 = vld [vmem:[%s2661_s29 + $0x180] sm:$0xff]  ;;  %v2088_v6 = vld [vmem:[%s2661_s29 + $0x188] sm:$0xff]  ;;  %v2089_v10 = vld [vmem:[%s2661_s29 + $0x190] sm:$0xff]  ;;  %2280 = vmatprep.subr.bf16.mxu0 %v2502_v20 }
  0x11   : > { %v396_v4 = vld [vmem:[%s2661_s29] sm:$0xff]  ;;  %559 = vxpose.xlu1.b32.start [1/16] (narrow) %v2087_v3, 16  ;;  %v397_v7 = vld [vmem:[%s2661_s29 + $0x8] sm:$0xff]  ;;  %v398_v11 = vld [vmem:[%s2661_s29 + $0x10] sm:$0xff]  ;;  %2401 = vmatpush3.bf16.msra.mxu1 %v2510_v32 }
  0x12   : > { %412 = vxpose.xlu0.b32.start [1/16] (narrow) %v396_v4, 16  ;;  %v2090_v12 = vld [vmem:[%s2661_s29 + $0x198] sm:$0xff]  ;;  %v2091_v14 = vld [vmem:[%s2661_s29 + $0x1a0] sm:$0xff]  ;;  %v2092_v16 = vld [vmem:[%s2661_s29 + $0x1a8] sm:$0xff]  ;;  %2402 = vmatprep.subr.bf16.mxu1 %v2513_v37 }
  0x13   : > { %v399_v13 = vld [vmem:[%s2661_s29 + $0x18] sm:$0xff]  ;;  %v400_v15 = vld [vmem:[%s2661_s29 + $0x20] sm:$0xff]  ;;  %v401_v17 = vld [vmem:[%s2661_s29 + $0x28] sm:$0xff]  ;;  %2281 = vmatpush3.bf16.msra.mxu0 %v2503_v21 }
  0x14   : > { %v2093_v18 = vld [vmem:[%s2661_s29 + $0x1b0] sm:$0xff]  ;;  %v2094_v23 = vld [vmem:[%s2661_s29 + $0x1b8] sm:$0xff]  ;;  %2282 = vmatprep.subr.bf16.mxu0 %v2505_v25  ;;  %v2095_v28 = vld [vmem:[%s2661_s29 + $0x1c0] sm:$0xff] }
  0x15   : > { %560 = vxpose.xlu1.b32.cont [2/16] (narrow) %v2088_v6, 16  ;;  %v402_v19 = vld [vmem:[%s2661_s29 + $0x30] sm:$0xff]  ;;  %v403_v24 = vld [vmem:[%s2661_s29 + $0x38] sm:$0xff]  ;;  %v404_v29 = vld [vmem:[%s2661_s29 + $0x40] sm:$0xff]  ;;  %2403 = vmatpush3.bf16.msra.mxu1 %v2513_v37 }
  0x16   : > { %413 = vxpose.xlu0.b32.cont [2/16] (narrow) %v397_v7, 16  ;;  %v2096_v33 = vld [vmem:[%s2661_s29 + $0x1c8] sm:$0xff]  ;;  %v2097_v39 = vld [vmem:[%s2661_s29 + $0x1d0] sm:$0xff]  ;;  %v2098_v43 = vld [vmem:[%s2661_s29 + $0x1d8] sm:$0xff]  ;;  %2404 = vmatprep.subr.bf16.mxu1 %v2516_v42 }
  0x17   : > { %2283 = vmatpush3.bf16.msra.mxu0 %v2506_v26  ;;  %v405_v34 = vld [vmem:[%s2661_s29 + $0x48] sm:$0xff]  ;;  %v406_v40 = vld [vmem:[%s2661_s29 + $0x50] sm:$0xff]  ;;  %v407_v44 = vld [vmem:[%s2661_s29 + $0x58] sm:$0xff] }
  0x18   : > { %2284 = vmatprep.subr.bf16.mxu0 %v2508_v30  ;;  %v2099_v45 = vld [vmem:[%s2661_s29 + $0x1e0] sm:$0xff]  ;;  %v2100_v47 = vld [vmem:[%s2661_s29 + $0x1e8] sm:$0xff]  ;;  %v2101_v49 = vld [vmem:[%s2661_s29 + $0x1f0] sm:$0xff] }
  0x19   : > { %561 = vxpose.xlu1.b32.cont [3/16] (narrow) %v2089_v10, 16  ;;  %2405 = vmatpush3.bf16.msra.mxu1 %v2516_v42  ;;  %v408_v46 = vld [vmem:[%s2661_s29 + $0x60] sm:$0xff]  ;;  %v409_v48 = vld [vmem:[%s2661_s29 + $0x68] sm:$0xff]  ;;  %v410_v50 = vld [vmem:[%s2661_s29 + $0x70] sm:$0xff] }
  0x1a   : > { %414 = vxpose.xlu0.b32.cont [3/16] (narrow) %v398_v11, 16  ;;  %v2102_v51 = vld [vmem:[%s2661_s29 + $0x1f8] sm:$0xff]  ;;  %v2071_v53 = vld [vmem:[%s2661_s29 + $0x100] sm:$0xff]  ;;  %v2072_v55 = vld [vmem:[%s2661_s29 + $0x108] sm:$0xff]  ;;  %2406 = vmatprep.subr.bf16.mxu1 %v2517_v57 }
  0x1b   : > { %2285 = vmatpush3.bf16.msra.mxu0 %v2509_v31  ;;  %v411_v52 = vld [vmem:[%s2661_s29 + $0x78] sm:$0xff]  ;;  %v2055_v54 = vld [vmem:[%s2661_s29 + $0x80] sm:$0xff]  ;;  %v2056_v56 = vld [vmem:[%s2661_s29 + $0x88] sm:$0xff] }
  0x1c   : > { %2286 = vmatprep.subr.bf16.mxu0 %v2511_v35  ;;  %v2073_v58 = vld [vmem:[%s2661_s29 + $0x110] sm:$0xff]  ;;  %v2074_v61 = vld [vmem:[%s2661_s29 + $0x118] sm:$0xff]  ;;  %v2075_v0 = vld [vmem:[%s2661_s29 + $0x120] sm:$0xff] }
  0x1d   : > { %562 = vxpose.xlu1.b32.cont [4/16] (narrow) %v2090_v12, 16  ;;  %v2057_v59 = vld [vmem:[%s2661_s29 + $0x90] sm:$0xff]  ;;  %2407 = vmatpush3.bf16.msra.mxu1 %v2517_v57  ;;  %v2058_v62 = vld [vmem:[%s2661_s29 + $0x98] sm:$0xff]  ;;  %v2059_v1 = vld [vmem:[%s2661_s29 + $0xa0] sm:$0xff] }
  0x1e   : > { %415 = vxpose.xlu0.b32.cont [4/16] (narrow) %v399_v13, 16  ;;  %2408 = vmatprep.subr.bf16.mxu1 %v2518_v60  ;;  %v2076_v2 = vld [vmem:[%s2661_s29 + $0x128] sm:$0xff]  ;;  %v2077_v4 = vld [vmem:[%s2661_s29 + $0x130] sm:$0xff]  ;;  %v2078_v6 = vld [vmem:[%s2661_s29 + $0x138] sm:$0xff] }
  0x1f   : > { %2287 = vmatpush3.bf16.msra.mxu0 %v2512_v36  ;;  %v2060_v3 = vld [vmem:[%s2661_s29 + $0xa8] sm:$0xff]  ;;  %v2061_v5 = vld [vmem:[%s2661_s29 + $0xb0] sm:$0xff]  ;;  %v2062_v7 = vld [vmem:[%s2661_s29 + $0xb8] sm:$0xff] }
  0x20   : > { %2288 = vmatprep.subr.bf16.mxu0 %v2514_v38  ;;  %v2079_v8 = vld [vmem:[%s2661_s29 + $0x140] sm:$0xff]  ;;  %v2080_v10 = vld [vmem:[%s2661_s29 + $0x148] sm:$0xff]  ;;  %v2081_v12 = vld [vmem:[%s2661_s29 + $0x150] sm:$0xff] }
  0x21   : > { %563 = vxpose.xlu1.b32.cont [5/16] (narrow) %v2091_v14, 16  ;;  %2409 = vmatpush3.bf16.msra.mxu1 %v2518_v60  ;;  %v2063_v9 = vld [vmem:[%s2661_s29 + $0xc0] sm:$0xff]  ;;  %v2064_v11 = vld [vmem:[%s2661_s29 + $0xc8] sm:$0xff]  ;;  %v2065_v13 = vld [vmem:[%s2661_s29 + $0xd0] sm:$0xff] }
  0x22   : > { %416 = vxpose.xlu0.b32.cont [5/16] (narrow) %v400_v15, 16  ;;  %2410 = vmatprep.subr.bf16.mxu1 %v2519_v63  ;;  %v2082_v14 = vld [vmem:[%s2661_s29 + $0x158] sm:$0xff]  ;;  %v2085_v20 = vld [vmem:[%s2661_s29 + $0x170] sm:$0xff]  ;;  %v2104_v25 = vld [vmem:[%s3331_s2] ss:$0 sm:$0xff] }
  0x23   : > { %2289 = vmatpush3.bf16.msra.mxu0 %v2515_v41  ;;  %v2066_v15 = vld [vmem:[%s2661_s29 + $0xd8] sm:$0xff]  ;;  %v2069_v21 = vld [vmem:[%s2661_s29 + $0xf0] sm:$0xff] }
  0x24   : > { %v2086_v22 = vld [vmem:[%s2661_s29 + $0x178] sm:$0xff] }
  0x25   : > { %564 = vxpose.xlu1.b32.cont [6/16] (narrow) %v2092_v16, 16  ;;  %2411 = vmatpush3.bf16.msra.mxu1 %v2519_v63  ;;  %v2083_v16 = vld [vmem:[%s2661_s29 + $0x160] sm:$0xff] }
  0x26   : > { %417 = vxpose.xlu0.b32.cont [6/16] (narrow) %v401_v17, 16  ;;  %v2067_v17 = vld [vmem:[%s2661_s29 + $0xe0] sm:$0xff] }
  0x29   : > { %565 = vxpose.xlu1.b32.cont [7/16] (narrow) %v2093_v18, 16  ;;  %v2084_v18 = vld [vmem:[%s2661_s29 + $0x168] sm:$0xff] }
  0x2a   : > { %418 = vxpose.xlu0.b32.cont [7/16] (narrow) %v402_v19, 16  ;;  %v2068_v19 = vld [vmem:[%s2661_s29 + $0xe8] sm:$0xff] }
  0x2d   : > { %566 = vxpose.xlu1.b32.cont [8/16] (narrow) %v2094_v23, 16  ;;  %v2070_v23 = vld [vmem:[%s2661_s29 + $0xf8] sm:$0xff] }
  0x2e   : > { %419 = vxpose.xlu0.b32.cont [8/16] (narrow) %v403_v24, 16  ;;  %v2103_v24 = vld [vmem:[%s3330_s1] ss:$0 sm:$0xff] }
  0x31   : > { %567 = vxpose.xlu1.b32.cont [9/16] (narrow) %v2095_v28, 16 }
  0x32   : > { %420 = vxpose.xlu0.b32.cont [9/16] (narrow) %v404_v29, 16  ;;  %v591_v29 = vlaneseq }
  0x34   : > { %v2809_v36 = vshrl.u32 %v591_v29, 7 }
  0x35   : > { %568 = vxpose.xlu1.b32.cont [10/16] (narrow) %v2096_v33, 16 }
  0x36   : > { %421 = vxpose.xlu0.b32.cont [10/16] (narrow) %v405_v34, 16  ;;  %vm642_vm0 = vcmp.lt.s32.totalorder %v2809_v36, 2  ;;  %vm632_vm1 = vcmp.ge.s32.totalorder %v2809_v36, 2  ;;  %v2839_v57 = vadd.s32 8, %v2809_v36  ;;  %vm669_vm5 = vcmp.lt.s32.totalorder %v2809_v36, 6 }
  0x37   : > { %vm2825_vm3 = vmpackc.low %vm2572_vm2, %vm632_vm1  ;;  %vm1068_vm7 = vcmp.lt.s32.totalorder %v2809_v36, 1  ;;  %vm1095_vm8 = vcmp.lt.s32.totalorder %v2809_v36, 7  ;;  %vm1058_vm11 = vcmp.ge.s32.totalorder %v2809_v36, 1  ;;  %vm1822_vm1 = vcmask 130048  }
  0x38   : > { %vm660_vm4 = vcmp.lt.s32.totalorder %v2839_v57, 14  ;;  %vm1086_vm9 = vcmp.lt.s32.totalorder %v2839_v57, 15  ;;  %vm2179_vm12 = vmpackc.low %vm2572_vm2, %vm1058_vm11 }
  0x39   : > { %569 = vxpose.xlu1.b32.cont [11/16] (narrow) %v2097_v39, 16  ;;  %vm2855_vm6 = vmpackc.low %vm660_vm4, %vm2572_vm2 }
  0x3a   : > { %422 = vxpose.xlu0.b32.cont [11/16] (narrow) %v406_v40, 16  ;;  %vm3023_vm10 = vmpackc.low %vm1086_vm9, %vm2572_vm2 }
  0x3d   : > { %570 = vxpose.xlu1.b32.cont [12/16] (narrow) %v2098_v43, 16 }
  0x3e   : > { %423 = vxpose.xlu0.b32.cont [12/16] (narrow) %v407_v44, 16 }
  0x41   : > { %571 = vxpose.xlu1.b32.cont [13/16] (narrow) %v2099_v45, 16 }
  0x42   : > { %424 = vxpose.xlu0.b32.cont [13/16] (narrow) %v408_v46, 16 }
  0x45   : > { %572 = vxpose.xlu1.b32.cont [14/16] (narrow) %v2100_v47, 16  ;;  %v2524_v47 = vld [vmem:[%s3335_s6] sm:$0xff]  }
  0x46   : > { %425 = vxpose.xlu0.b32.cont [14/16] (narrow) %v409_v48, 16 }
  0x49   : > { %573 = vxpose.xlu1.b32.cont [15/16] (narrow) %v2101_v49, 16 }
  0x4a   : > { %426 = vxpose.xlu0.b32.cont [15/16] (narrow) %v410_v50, 16 }
  0x4d   : > { %574 = vxpose.xlu1.b32.end [16/16] (narrow) %v2102_v51, 16 }
  0x4e   : > { %427 = vxpose.xlu0.b32.end [16/16] (narrow) %v411_v52, 16 }
  0x51   : > { %510 = vxpose.xlu1.b32.start [1/16] (narrow) %v2071_v53, 16 }
  0x52   : > { %461 = vxpose.xlu0.b32.start [1/16] (narrow) %v2055_v54, 16 }
  0x55   : > { %511 = vxpose.xlu1.b32.cont [2/16] (narrow) %v2072_v55, 16 }
  0x56   : > { %462 = vxpose.xlu0.b32.cont [2/16] (narrow) %v2056_v56, 16 }
  0x59   : > { %512 = vxpose.xlu1.b32.cont [3/16] (narrow) %v2073_v58, 16 }
  0x5a   : > { %463 = vxpose.xlu0.b32.cont [3/16] (narrow) %v2057_v59, 16 }
  0x5d   : > { %513 = vxpose.xlu1.b32.cont [4/16] (narrow) %v2074_v61, 16 }
  0x5e   : > { %464 = vxpose.xlu0.b32.cont [4/16] (narrow) %v2058_v62, 16 }
  0x61   : > { %514 = vxpose.xlu1.b32.cont [5/16] (narrow) %v2075_v0, 16 }
  0x62   : > { %465 = vxpose.xlu0.b32.cont [5/16] (narrow) %v2059_v1, 16 }
  0x65   : > { %515 = vxpose.xlu1.b32.cont [6/16] (narrow) %v2076_v2, 16 }
  0x66   : > { %466 = vxpose.xlu0.b32.cont [6/16] (narrow) %v2060_v3, 16 }
  0x69   : > { %516 = vxpose.xlu1.b32.cont [7/16] (narrow) %v2077_v4, 16 }
  0x6a   : > { %467 = vxpose.xlu0.b32.cont [7/16] (narrow) %v2061_v5, 16 }
  0x6d   : > { %517 = vxpose.xlu1.b32.cont [8/16] (narrow) %v2078_v6, 16 }
  0x6e   : > { %468 = vxpose.xlu0.b32.cont [8/16] (narrow) %v2062_v7, 16 }
  0x71   : > { %518 = vxpose.xlu1.b32.cont [9/16] (narrow) %v2079_v8, 16 }
  0x72   : > { %469 = vxpose.xlu0.b32.cont [9/16] (narrow) %v2063_v9, 16 }
  0x75   : > { %519 = vxpose.xlu1.b32.cont [10/16] (narrow) %v2080_v10, 16 }
  0x76   : > { %470 = vxpose.xlu0.b32.cont [10/16] (narrow) %v2064_v11, 16 }
  0x79   : > { %520 = vxpose.xlu1.b32.cont [11/16] (narrow) %v2081_v12, 16  ;;  %v2543_v12 = vld [vmem:[%s3335_s6 + $0x38] sm:$0xff]  }
  0x7a   : > { %471 = vxpose.xlu0.b32.cont [11/16] (narrow) %v2065_v13, 16 }
  0x7d   : > { %521 = vxpose.xlu1.b32.cont [12/16] (narrow) %v2082_v14, 16 }
  0x7e   : > { %472 = vxpose.xlu0.b32.cont [12/16] (narrow) %v2066_v15, 16 }
  0x81   : > { %522 = vxpose.xlu1.b32.cont [13/16] (narrow) %v2083_v16, 16 }
  0x82   : > { %473 = vxpose.xlu0.b32.cont [13/16] (narrow) %v2067_v17, 16 }
  0x85   : > { %523 = vxpose.xlu1.b32.cont [14/16] (narrow) %v2084_v18, 16 }
  0x86   : > { %474 = vxpose.xlu0.b32.cont [14/16] (narrow) %v2068_v19, 16 }
  0x89   : > { %524 = vxpose.xlu1.b32.cont [15/16] (narrow) %v2085_v20, 16 }
  0x8a   : > { %475 = vxpose.xlu0.b32.cont [15/16] (narrow) %v2069_v21, 16 }
  0x8d   : > { %525 = vxpose.xlu1.b32.end [16/16] (narrow) %v2086_v22, 16 }
  0x8e   : > { %476 = vxpose.xlu0.b32.end [16/16] (narrow) %v2070_v23, 16 }
  0x91   : > { %v2796_v26 = vpop.trf.xlu1 }
  0x92   : > { %v2798_v27 = vpop.trf.xlu0  ;;  %v607_v49 = vmul.f32 %v2103_v24, %v2796_v26 }
  0x93   : > { %v601_v28 = vmul.f32 %v2103_v24, %v2798_v27 }
  0x94   : > { %v622_v54 = vadd.f32 %v2104_v25, %v607_v49 }
  0x95   : > { %v616_v30 = vadd.f32 %v2104_v25, %v601_v28  ;;  %v2801_v31 = vpop.trf.xlu1 }
  0x96   : > { %v2803_v32 = vpop.trf.xlu0  ;;  %v608_v34 = vmul.f32 %v2103_v24, %v2801_v31  ;;  %v630_v2 = vmax.f32 %v622_v54, 0.0  ;;  %v2521_v54 = vld [vmem:[%s3335_s6 + $0x88] sm:$0xff]  }
  0x97   : > { %v2805_v33 = vmax.f32 %v616_v30, 0.0  ;;  %v602_v35 = vmul.f32 %v2103_v24, %v2803_v32 }
  0x98   : > { %v623_v37 = vadd.f32 %v2104_v25, %v608_v34  ;;  %v667_v13 = vrot.slane %v630_v2, 2 }
  0x99   : > { %v617_v38 = vadd.f32 %v2104_v25, %v602_v35  ;;  %v634_v39 = vrot.slane %v2805_v33, 6  ;;  %v661_v0 = vrot.slane %v2805_v33, 2 }
  0x9a   : > { %v2812_v40 = vmax.f32 %v623_v37, 0.0 }
  0x9b   : > { %v625_v41 = vmax.f32 %v617_v38, 0.0 }
  0x9c   : > { %v641_v42 = vrot.slane %v2812_v40, 6 }
  0x9d   : > { %v635_v43 = vrot.slane %v625_v41, 6  ;;  %v687_v44 = vpack.c.bf16 %v625_v41, %v2805_v33  ;;  %v662_v1 = vrot.slane %v625_v41, 2  ;;  %v668_v33 = vrot.slane %v2812_v40, 2 }
  0x9e   : > { %v650_v45 = vsel %vm642_vm0, %v641_v42, %v634_v39 }
  0x9f   : > { %922 = vmatprep.mubr.bf16.mxu0 %v687_v44  ;;  %v649_v46 = vsel %vm642_vm0, %v634_v39, %v635_v43  ;;  %v676_v11 = vsel %vm669_vm5, %v661_v0, %v662_v1  ;;  %v670_v39 = vsel %vm669_vm5, %v667_v13, %v668_v33  ;;  %v677_v41 = vsel %vm669_vm5, %v668_v33, %v661_v0  ;;  %v2531_v0 = vld [vmem:[%s3335_s6 + $0xa8] sm:$0xff]  }
  0xa0   : > { %v2130_v48 = vpack.c.bf16 %v649_v46, %v650_v45  ;;  %v2151_v44 = vpack.c.bf16 %v677_v41, %v670_v39  ;;  %v696_v45 = vpack.c.bf16 %v2812_v40, %v630_v2  ;;  %v640_v46 = vrot.slane %v630_v2, 6  ;;  %v2522_v40 = vld [vmem:[%s3335_s6 + $0x90] sm:$0xff]   ;;  %v2533_v2 = vld [vmem:[%s3335_s6 + $0x18] sm:$0xff]  }
  0xa2   : > { %2131 = vmatmul.mubr.msk.bf16.vlgmr.msra.gmra.mrb[0].mxu0 %vm2825_vm3, %v2130_v48  ;;  %v643_v49 = vsel %vm642_vm0, %v640_v46, %v641_v42  ;;  %v2523_v42 = vld [vmem:[%s3335_s6 + $0x40] sm:$0xff]  }
  0xa3   : > { %2326 = vmatprep.subr.bf16.mxu0 %v2523_v42 }
  0xa4   : > { %2327 = vmatpush3.bf16.msra.mxu0 %v2524_v47 }
  0xd1   : > { %v2832_v50 = vpop.trf.xlu1 }
  0xd2   : > { %v2834_v51 = vpop.trf.xlu0  ;;  %v605_v52 = vmul.f32 %v2103_v24, %v2832_v50 }
  0xd3   : > { %v603_v53 = vmul.f32 %v2103_v24, %v2834_v51 }
  0xd4   : > { %v620_v55 = vadd.f32 %v2104_v25, %v605_v52 }
  0xd5   : > { %v618_v56 = vadd.f32 %v2104_v25, %v603_v53  ;;  %v2841_v58 = vpop.trf.xlu1  ;;  %v2520_v53 = vld [vmem:[%s3335_s6 + $0x80] sm:$0xff]  }
  0xd6   : > { %v2843_v59 = vpop.trf.xlu0  ;;  %v628_v60 = vmax.f32 %v620_v55, 0.0  ;;  %v606_v62 = vmul.f32 %v2103_v24, %v2841_v58  ;;  %2420 = vmatprep.subr.bf16.mxu1 %v2520_v53  ;;  %v2525_v55 = vld [vmem:[%s3335_s6 + $0x98] sm:$0xff]  }
  0xd7   : > { %v626_v61 = vmax.f32 %v618_v56, 0.0  ;;  %v604_v63 = vmul.f32 %v2103_v24, %v2843_v59  ;;  %v2526_v56 = vld [vmem:[%s3335_s6 + $0x48] sm:$0xff]  }
  0xd8   : > { %v621_v3 = vadd.f32 %v2104_v25, %v606_v62  ;;  %v665_v6 = vrot.slane %v628_v60, 2  ;;  %v638_v34 = vrot.slane %v628_v60, 6  ;;  %2328 = vmatprep.subr.bf16.mxu0 %v2526_v56  ;;  %v2529_v62 = vld [vmem:[%s3335_s6 + $0x50] sm:$0xff]  }
  0xd9   : > { %v619_v4 = vadd.f32 %v2104_v25, %v604_v63  ;;  %v663_v5 = vrot.slane %v626_v61, 2  ;;  %v636_v7 = vrot.slane %v626_v61, 6  ;;  %v2530_v63 = vld [vmem:[%s3335_s6 + $0x10] sm:$0xff]  }
  0xda   : > { %v629_v8 = vmax.f32 %v621_v3, 0.0  ;;  %v2534_v3 = vld [vmem:[%s3335_s6 + $0xb0] sm:$0xff]  }
  0xdb   : > { %v627_v9 = vmax.f32 %v619_v4, 0.0  ;;  %v675_v10 = vsel %vm669_vm5, %v662_v1, %v663_v5  ;;  %v648_v19 = vsel %vm642_vm0, %v635_v43, %v636_v7  ;;  %v2532_v1 = vld [vmem:[%s3335_s6 + $0x58] sm:$0xff]   ;;  %v2535_v4 = vld [vmem:[%s3335_s6 + $0x60] sm:$0xff]  }
  0xdc   : > { %v666_v14 = vrot.slane %v629_v8, 2  ;;  %v2142_v15 = vpack.c.bf16 %v675_v10, %v676_v11  ;;  %v693_v20 = vpack.c.bf16 %v629_v8, %v628_v60  ;;  %v639_v35 = vrot.slane %v629_v8, 6  ;;  %v2527_v60 = vld [vmem:[%s3335_s6 + $0x8] sm:$0xff]   ;;  %v2541_v10 = vld [vmem:[%s3335_s6 + $0x30] sm:$0xff]   ;;  %v2542_v11 = vld [vmem:[%s3335_s6 + $0x78] sm:$0xff]  }
  0xdd   : > { %v637_v16 = vrot.slane %v627_v9, 6  ;;  %v664_v17 = vrot.slane %v627_v9, 2  ;;  %v690_v18 = vpack.c.bf16 %v627_v9, %v626_v61  ;;  %v2528_v61 = vld [vmem:[%s3335_s6 + $0xa0] sm:$0xff]   ;;  %2329 = vmatpush3.bf16.msra.mxu0 %v2527_v60  ;;  %v2539_v8 = vld [vmem:[%s3335_s6 + $0x28] sm:$0xff]   ;;  %v2540_v9 = vld [vmem:[%s3335_s6 + $0x70] sm:$0xff]  }
  0xde   : > { %2412 = vmatprep.mubr.msk.bf16.mxu1 %vm2855_vm6, %v2142_v15  ;;  %v671_v21 = vsel %vm669_vm5, %v666_v14, %v667_v13  ;;  %v672_v22 = vsel %vm669_vm5, %v665_v6, %v666_v14  ;;  %v645_v37 = vsel %vm642_vm0, %v638_v34, %v639_v35  ;;  %v644_v48 = vsel %vm642_vm0, %v639_v35, %v640_v46 }
  0xdf   : > { %930 = vmatprep.mubr.bf16.mxu0 %v690_v18  ;;  %v647_v23 = vsel %vm642_vm0, %v636_v7, %v637_v16  ;;  %v673_v24 = vsel %vm669_vm5, %v664_v17, %v665_v6  ;;  %v674_v25 = vsel %vm669_vm5, %v663_v5, %v664_v17  ;;  %v2148_v28 = vpack.c.bf16 %v671_v21, %v672_v22  ;;  %v2536_v5 = vld [vmem:[%s3335_s6 + $0x20] sm:$0xff]   ;;  %v2537_v6 = vld [vmem:[%s3335_s6 + $0xb8] sm:$0xff]   ;;  %v2538_v7 = vld [vmem:[%s3335_s6 + $0x68] sm:$0xff]  }
  0xe0   : > { %v2133_v29 = vpack.c.bf16 %v647_v23, %v648_v19  ;;  %v2145_v30 = vpack.c.bf16 %v673_v24, %v674_v25  ;;  %v646_v38 = vsel %vm642_vm0, %v637_v16, %v638_v34  ;;  %v2139_v52 = vpack.c.bf16 %v643_v49, %v644_v48  ;;  %2330 = vmatprep.subr.bf16.mxu0 %v2529_v62  ;;  %v2976_v22 = vld [vmem:[%s3333_s4] ss:$0 sm:$0xff] }
  0xe1   : > { %v2136_v43 = vpack.c.bf16 %v645_v37, %v646_v38  ;;  %2331 = vmatpush3.bf16.msra.mxu0 %v2530_v63  ;;  %vm1518_vm0 = vcmask 1043459  }
  0xe2   : > { %2134 = vmatmul.mubr.msk.bf16.gmra.mrb[4].mxu0 %vm2825_vm3, %v2133_v29  ;;  %2413 = vmatmul.mubr.msk.bf16.vlgmr.msra.gmra.mrb[0].mxu1 %vm2855_vm6, %v2145_v30  ;;  %v2981_v30 = vld [vmem:[%s3334_s5] ss:$0 sm:$0xff] }
  0xe3   : > { %938 = vmatprep.mubr.bf16.mxu0 %v693_v20  ;;  %2416 = vmatprep.mubr.msk.bf16.mxu1 %vm2855_vm6, %v2148_v28 }
  0xe4   : > { %2421 = vmatpush3.bf16.msra.mxu1 %v2520_v53  ;;  %2332 = vmatprep.subr.bf16.mxu0 %v2532_v1 }
  0xe5   : > { %2422 = vmatprep.subr.bf16.mxu1 %v2521_v54  ;;  %2333 = vmatpush3.bf16.msra.mxu0 %v2533_v2 }
  0xe6   : > { %2334 = vmatprep.subr.bf16.mxu0 %v2535_v4 }
  0xe8   : > { %2423 = vmatpush3.bf16.msra.mxu1 %v2521_v54 }
  0xe9   : > { %2424 = vmatprep.subr.bf16.mxu1 %v2522_v40  ;;  %2335 = vmatpush3.bf16.msra.mxu0 %v2536_v5 }
  0xea   : > { %2137 = vmatmul.mubr.msk.bf16.gmra.mrb[8].mxu0 %vm2825_vm3, %v2136_v43  ;;  %2417 = vmatmul.mubr.msk.bf16.gmra.mrb[4].mxu1 %vm2855_vm6, %v2151_v44 }
  0xeb   : > { %946 = vmatprep.mubr.bf16.mxu0 %v696_v45  ;;  %2336 = vmatprep.subr.bf16.mxu0 %v2538_v7 }
  0xec   : > { %2425 = vmatpush3.bf16.msra.mxu1 %v2522_v40 }
  0xed   : > { %2426 = vmatprep.subr.bf16.mxu1 %v2525_v55  ;;  %2337 = vmatpush3.bf16.msra.mxu0 %v2539_v8 }
  0xee   : > { %2338 = vmatprep.subr.bf16.mxu0 %v2540_v9 }
  0xf0   : > { %2427 = vmatpush3.bf16.msra.mxu1 %v2525_v55 }
  0xf1   : > { %2428 = vmatprep.subr.bf16.mxu1 %v2528_v61  ;;  %2339 = vmatpush3.bf16.msra.mxu0 %v2541_v10 }
  0xf2   : > { %2140 = vmatmul.mubr.msk.bf16.gmra.mrb[12].mxu0 %vm2825_vm3, %v2139_v52  ;;  %2340 = vmatprep.subr.bf16.mxu0 %v2542_v11 }
  0xf4   : > { %2429 = vmatpush3.bf16.msra.mxu1 %v2528_v61 }
  0xf5   : > { %2430 = vmatprep.subr.bf16.mxu1 %v2531_v0  ;;  %2341 = vmatpush3.bf16.msra.mxu0 %v2543_v12 }
  0xf8   : > { %2431 = vmatpush3.bf16.msra.mxu1 %v2531_v0 }
  0xf9   : > { %2432 = vmatprep.subr.bf16.mxu1 %v2534_v3 }
  0xfc   : > { %2433 = vmatpush3.bf16.msra.mxu1 %v2534_v3 }
  0xfd   : > { %2434 = vmatprep.subr.bf16.mxu1 %v2537_v6 }
 0x100   : > { %2435 = vmatpush3.bf16.msra.mxu1 %v2537_v6 }
 0x175   : > { %v2290_v13 = vpop.f32.mrb[0].mxu0 }
 0x176   : > { %v2291_v14 = vpop.f32.mrb[1].mxu0 }
 0x177   : > { %v2292_v15 = vadd.f32 %v2291_v14, %v2290_v13  ;;  %v2293_v16 = vpop.f32.mrb[2].mxu0 }
 0x178   : > { %v2294_v17 = vpop.f32.mrb[3].mxu0 }
 0x179   : > { %v2295_v18 = vadd.f32 %v2294_v17, %v2293_v16 }
 0x1b5   : > { %v2296_v19 = vpop.f32.mrb[4].mxu0  ;;  %v2414_v20 = vpop.f32.mrb[0].mxu1 }
 0x1b6   : > { %v2297_v21 = vpop.f32.mrb[5].mxu0  ;;  %v989_v23 = vpop.f32.mrb[1].mxu1 }
 0x1b7   : > { %v2298_v24 = vadd.f32 %v2297_v21, %v2296_v19  ;;  %v990_v25 = vadd.f32 %v2292_v15, %v989_v23  ;;  %v2299_v28 = vpop.f32.mrb[6].mxu0  ;;  %v2415_v29 = vpop.f32.mrb[2].mxu1  ;;  %v2550_v19 = vld [vmem:[%s3336_s7 + $0x30] sm:$0xff]  }
 0x1b8   : > { %v2300_v33 = vpop.f32.mrb[7].mxu0  ;;  %v992_v34 = vpop.f32.mrb[3].mxu1 }
 0x1b9   : > { %v998_v35 = vadd.f32 %v2414_v20, %v2298_v24  ;;  %v1027_v37 = vmul.f32 %v2976_v22, %v990_v25  ;;  %v2301_v38 = vadd.f32 %v2300_v33, %v2299_v28  ;;  %v993_v39 = vadd.f32 %v2295_v18, %v992_v34 }
 0x1bb   : > { %v1029_v41 = vmul.f32 %v2976_v22, %v998_v35  ;;  %v1042_v43 = vadd.f32 %v2981_v30, %v1027_v37  ;;  %v1001_v44 = vadd.f32 %v2415_v29, %v2301_v38  ;;  %v1028_v45 = vmul.f32 %v2976_v22, %v993_v39 }
 0x1bd   : > { %v1044_v46 = vadd.f32 %v2981_v30, %v1029_v41  ;;  %v2988_v48 = vmax.f32 %v1042_v43, 0.0  ;;  %v1030_v49 = vmul.f32 %v2976_v22, %v1001_v44  ;;  %v1043_v52 = vadd.f32 %v2981_v30, %v1028_v45  ;;  %v2302_v53 = vpop.f32.mrb[8].mxu0  ;;  %v2418_v54 = vpop.f32.mrb[4].mxu1 }
 0x1be   : > { %v2303_v40 = vpop.f32.mrb[9].mxu0  ;;  %v1005_v42 = vpop.f32.mrb[5].mxu1 }
 0x1bf   : > { %v2993_v47 = vmax.f32 %v1044_v46, 0.0  ;;  %v1045_v55 = vadd.f32 %v2981_v30, %v1030_v49  ;;  %v2305_v56 = vpop.f32.mrb[10].mxu0  ;;  %v2419_v60 = vpop.f32.mrb[6].mxu1  ;;  %v1060_v61 = vrot.slane %v2988_v48, 7  ;;  %v1087_v62 = vrot.slane %v2988_v48, 1 }
 0x1c0   : > { %v1051_v63 = vmax.f32 %v1043_v52, 0.0  ;;  %v2304_v0 = vadd.f32 %v2303_v40, %v2302_v53  ;;  %v2306_v1 = vpop.f32.mrb[11].mxu0  ;;  %v1008_v2 = vpop.f32.mrb[7].mxu1 }
 0x1c1   : > { %v1062_v3 = vrot.slane %v2993_v47, 7  ;;  %v1089_v4 = vrot.slane %v2993_v47, 1  ;;  %v3002_v5 = vmax.f32 %v1045_v55, 0.0  ;;  %v2307_v6 = vadd.f32 %v2306_v1, %v2305_v56 }
 0x1c2   : > { %v1061_v7 = vrot.slane %v1051_v63, 7  ;;  %v1088_v8 = vrot.slane %v1051_v63, 1  ;;  %v1006_v9 = vadd.f32 %v2304_v0, %v1005_v42  ;;  %v1113_v10 = vpack.c.bf16 %v1051_v63, %v2988_v48  ;;  %v2544_v48 = vld [vmem:[%s3336_s7] sm:$0xff]  }
 0x1c3   : > { %v1063_v11 = vrot.slane %v3002_v5, 7  ;;  %v1090_v12 = vrot.slane %v3002_v5, 1  ;;  %v1009_v13 = vadd.f32 %v2307_v6, %v1008_v2  ;;  %v1116_v14 = vpack.c.bf16 %v3002_v5, %v2993_v47  ;;  %v2545_v47 = vld [vmem:[%s3336_s7 + $0x8] sm:$0xff]   ;;  %v2547_v5 = vld [vmem:[%s3336_s7 + $0x18] sm:$0xff]  }
 0x1c4   : > { %v1075_v15 = vsel %vm1068_vm7, %v1060_v61, %v1061_v7  ;;  %v1031_v16 = vmul.f32 %v2976_v22, %v1006_v9  ;;  %1348 = vmatprep.mubr.bf16.mxu0 %v1113_v10  ;;  %v1101_v17 = vsel %vm1095_vm8, %v1088_v8, %v1089_v4  ;;  %v1102_v18 = vsel %vm1095_vm8, %v1087_v62, %v1088_v8 }
 0x1c5   : > { %v1100_v20 = vsel %vm1095_vm8, %v1089_v4, %v1090_v12  ;;  %v1032_v21 = vmul.f32 %v2976_v22, %v1009_v13  ;;  %v2308_v23 = vpop.f32.mrb[12].mxu0  ;;  %v2192_v24 = vpack.c.bf16 %v1101_v17, %v1102_v18  ;;  %v1073_v25 = vsel %vm1068_vm7, %v1062_v3, %v1063_v11 }
 0x1c6   : > { %v1046_v28 = vadd.f32 %v2981_v30, %v1031_v16  ;;  %v2309_v29 = vpop.f32.mrb[13].mxu0  ;;  %v1074_v57 = vsel %vm1068_vm7, %v1061_v7, %v1062_v3 }
 0x1c7   : > { %v1047_v33 = vadd.f32 %v2981_v30, %v1032_v21  ;;  %v2310_v34 = vadd.f32 %v2309_v29, %v2308_v23  ;;  %2436 = vmatprep.mubr.msk.bf16.mxu1 %vm3023_vm10, %v2192_v24  ;;  %v2311_v35 = vpop.f32.mrb[14].mxu0  ;;  %v2183_v37 = vpack.c.bf16 %v1073_v25, %v1074_v57  ;;  %v2551_v24 = vld [vmem:[%s3336_s7 + $0x38] sm:$0xff]   ;;  %v2552_v25 = vld [vmem:[%s3338_s9] sm:$0xff]   ;;  %v2554_v29 = vld [vmem:[%s3338_s9 + $0x10] sm:$0xff]  }
 0x1c8   : > { %v1054_v38 = vmax.f32 %v1046_v28, 0.0  ;;  %v2312_v39 = vpop.f32.mrb[15].mxu0  ;;  %v2553_v28 = vld [vmem:[%s3338_s9 + $0x8] sm:$0xff]   ;;  %v2555_v57 = vld [vmem:[%s3338_s9 + $0x18] sm:$0xff]  }
 0x1c9   : > { %v1055_v41 = vmax.f32 %v1047_v33, 0.0  ;;  %v1014_v43 = vadd.f32 %v2418_v54, %v2310_v34  ;;  %v2313_v44 = vadd.f32 %v2312_v39, %v2311_v35  ;;  %v2556_v33 = vld [vmem:[%s3338_s9 + $0x20] sm:$0xff]   ;;  %v2557_v34 = vld [vmem:[%s3338_s9 + $0x28] sm:$0xff]  }
 0x1ca   : > { %v1064_v45 = vrot.slane %v1054_v38, 7  ;;  %v1091_v46 = vrot.slane %v1054_v38, 1 }
 0x1cb   : > { %v1065_v49 = vrot.slane %v1055_v41, 7  ;;  %v1092_v52 = vrot.slane %v1055_v41, 1  ;;  %v1033_v53 = vmul.f32 %v2976_v22, %v1014_v43  ;;  %v1017_v40 = vadd.f32 %v2419_v60, %v2313_v44 }
 0x1cc   : > { %v1099_v42 = vsel %vm1095_vm8, %v1090_v12, %v1091_v46  ;;  %v1119_v55 = vpack.c.bf16 %v1055_v41, %v1054_v38  ;;  %v1072_v56 = vsel %vm1068_vm7, %v1063_v11, %v1064_v45 }
 0x1cd   : > { %v2195_v63 = vpack.c.bf16 %v1099_v42, %v1100_v20  ;;  %v1048_v0 = vadd.f32 %v2981_v30, %v1033_v53  ;;  %v1034_v54 = vmul.f32 %v2976_v22, %v1017_v40  ;;  %v1098_v1 = vsel %vm1095_vm8, %v1091_v46, %v1092_v52 }
 0x1ce   : > { %v1071_v2 = vsel %vm1068_vm7, %v1064_v45, %v1065_v49 }
 0x1cf   : > { %v1056_v3 = vmax.f32 %v1048_v0, 0.0  ;;  %v1049_v60 = vadd.f32 %v2981_v30, %v1034_v54  ;;  %2437 = vmatmul.mubr.msk.bf16.vlgmr.msra.gmra.mrb[8].mxu1 %vm3023_vm10, %v2195_v63  ;;  %v2186_v4 = vpack.c.bf16 %v1071_v2, %v1072_v56 }
 0x1d1   : > { %v1066_v6 = vrot.slane %v1056_v3, 7  ;;  %v1093_v7 = vrot.slane %v1056_v3, 1  ;;  %v1057_v8 = vmax.f32 %v1049_v60, 0.0 }
 0x1d3   : > { %v1067_v9 = vrot.slane %v1057_v8, 7  ;;  %v1094_v22 = vrot.slane %v1057_v8, 1  ;;  %v1097_v10 = vsel %vm1095_vm8, %v1092_v52, %v1093_v7  ;;  %v1122_v11 = vpack.c.bf16 %v1057_v8, %v1056_v3 }
 0x1d4   : > { %v2198_v12 = vpack.c.bf16 %v1097_v10, %v1098_v1  ;;  %v1070_v13 = vsel %vm1068_vm7, %v1065_v49, %v1066_v6 }
 0x1d5   : > { %v1076_v30 = vsel %vm1068_vm7, %v1067_v9, %v1060_v61  ;;  %v1096_v16 = vsel %vm1095_vm8, %v1093_v7, %v1094_v22  ;;  %v1103_v17 = vsel %vm1095_vm8, %v1094_v22, %v1087_v62  ;;  %v1069_v18 = vsel %vm1068_vm7, %v1066_v6, %v1067_v9  ;;  %v2546_v62 = vld [vmem:[%s3336_s7 + $0x10] sm:$0xff]  }
 0x1d6   : > { %v2180_v20 = vpack.c.bf16 %v1075_v15, %v1076_v30  ;;  %2440 = vmatprep.mubr.msk.bf16.mxu1 %vm3023_vm10, %v2198_v12  ;;  %v2201_v21 = vpack.c.bf16 %v1103_v17, %v1096_v16  ;;  %v2189_v23 = vpack.c.bf16 %v1069_v18, %v1070_v13  ;;  %v2573_v61 = vmov 0.0   ;;  %v2549_v15 = vld [vmem:[%s3336_s7 + $0x28] sm:$0xff]  }
 0x1d7   : > { %2444 = vmatprep.subr.bf16.mxu0 %v2573_v61  ;;  %2464 = vmatprep.subr.bf16.mxu1 %v2573_v61 }
 0x1d8   : > { %2181 = vmatmul.mubr.msk.bf16.vlgmr.msra.gmra.mrb[16].mxu0 %vm2179_vm12, %v2180_v20  ;;  %2441 = vmatmul.mubr.msk.bf16.gmra.mrb[12].mxu1 %vm3023_vm10, %v2201_v21 }
 0x1d9   : > { %1356 = vmatprep.mubr.bf16.mxu0 %v1116_v14  ;;  %2445 = vmatpush3.bf16.msra.mxu0 %v2544_v48  ;;  %v2548_v14 = vld [vmem:[%s3336_s7 + $0x20] sm:$0xff]  }
 0x1da   : > { %2446 = vmatprep.subr.bf16.mxu0 %v2573_v61  ;;  %2480 = vmatprep.mubr.msk.bf16.mxu1 %vm2574_vm13, %v2573_v61 }
 0x1db   : > { %2465 = vmatpush3.bf16.msra.mxu1 %v2552_v25 }
 0x1dc   : > { %2466 = vmatprep.subr.bf16.mxu1 %v2573_v61 }
 0x1dd   : > { %2447 = vmatpush3.bf16.msra.mxu0 %v2545_v47 }
 0x1de   : > { %2448 = vmatprep.subr.bf16.mxu0 %v2573_v61 }
 0x1df   : > { %2467 = vmatpush3.bf16.msra.mxu1 %v2553_v28 }
 0x1e0   : > { %2184 = vmatmul.mubr.msk.bf16.gmra.mrb[20].mxu0 %vm2179_vm12, %v2183_v37  ;;  %2468 = vmatprep.subr.bf16.mxu1 %v2573_v61 }
 0x1e1   : > { %1364 = vmatprep.mubr.bf16.mxu0 %v1119_v55  ;;  %2449 = vmatpush3.bf16.msra.mxu0 %v2546_v62 }
 0x1e2   : > { %2450 = vmatprep.subr.bf16.mxu0 %v2573_v61 }
 0x1e3   : > { %2469 = vmatpush3.bf16.msra.mxu1 %v2554_v29 }
 0x1e4   : > { %2470 = vmatprep.subr.bf16.mxu1 %v2573_v61 }
 0x1e5   : > { %2451 = vmatpush3.bf16.msra.mxu0 %v2547_v5 }
 0x1e6   : > { %2452 = vmatprep.subr.bf16.mxu0 %v2573_v61 }
 0x1e7   : > { %2471 = vmatpush3.bf16.msra.mxu1 %v2555_v57 }
 0x1e8   : > { %2187 = vmatmul.mubr.msk.bf16.gmra.mrb[24].mxu0 %vm2179_vm12, %v2186_v4  ;;  %2472 = vmatprep.subr.bf16.mxu1 %v2573_v61 }
 0x1e9   : > { %1372 = vmatprep.mubr.bf16.mxu0 %v1122_v11  ;;  %2453 = vmatpush3.bf16.msra.mxu0 %v2548_v14 }
 0x1ea   : > { %2454 = vmatprep.subr.bf16.mxu0 %v2573_v61 }
 0x1eb   : > { %2473 = vmatpush3.bf16.msra.mxu1 %v2556_v33 }
 0x1ec   : > { %2474 = vmatprep.subr.bf16.mxu1 %v2573_v61 }
 0x1ed   : > { %2455 = vmatpush3.bf16.msra.mxu0 %v2549_v15 }
 0x1ee   : > { %2456 = vmatprep.subr.bf16.mxu0 %v2573_v61 }
 0x1ef   : > { %2475 = vmatpush3.bf16.msra.mxu1 %v2557_v34 }
 0x1f0   : > { %2190 = vmatmul.mubr.msk.bf16.gmra.mrb[28].mxu0 %vm2179_vm12, %v2189_v23  ;;  %2476 = vmatprep.subr.bf16.mxu1 %v2573_v61 }
 0x1f1   : > { %2457 = vmatpush3.bf16.msra.mxu0 %v2550_v19  ;;  %2460 = vmatprep.mubr.msk.bf16.mxu0 %vm2574_vm13, %v2573_v61 }
 0x1f2   : > { %2458 = vmatprep.subr.bf16.mxu0 %v2573_v61 }
 0x1f5   : > { %2459 = vmatpush3.bf16.msra.mxu0 %v2551_v24 }
 0x2a2   : > { %v2438_v35 = vpop.f32.mrb[8].mxu1 }
 0x2a3   : > { %v1415_v37 = vpop.f32.mrb[9].mxu1 }
 0x2a4   : > { %v2439_v38 = vpop.f32.mrb[10].mxu1 }
 0x2a5   : > { %v1418_v39 = vpop.f32.mrb[11].mxu1 }
 0x2ab   : > { %v2342_v41 = vpop.f32.mrb[16].mxu0  ;;  %v2442_v43 = vpop.f32.mrb[12].mxu1 }
 0x2ac   : > { %v2343_v44 = vpop.f32.mrb[17].mxu0  ;;  %v1431_v45 = vpop.f32.mrb[13].mxu1 }
 0x2ad   : > { %v2344_v46 = vadd.f32 %v2343_v44, %v2342_v41  ;;  %v2345_v49 = vpop.f32.mrb[18].mxu0  ;;  %v2443_v52 = vpop.f32.mrb[14].mxu1 }
 0x2ae   : > { %v2346_v53 = vpop.f32.mrb[19].mxu0  ;;  %v1434_v40 = vpop.f32.mrb[15].mxu1 }
 0x2af   : > { %v3136_v42 = vadd.f32 %v2344_v46, %v1415_v37  ;;  %v2347_v55 = vadd.f32 %v2346_v53, %v2345_v49 }
 0x2b1   : > { %v3138_v56 = vadd.f32 %v2347_v55, %v1418_v39 }
 0x2b3   : > { %v2348_v63 = vpop.f32.mrb[20].mxu0  ;;  %v1446_v3 = vadd.f32 %v3138_v56, %v3136_v42 }
 0x2b4   : > { %v2349_v0 = vpop.f32.mrb[21].mxu0 }
 0x2b5   : > { %v2350_v54 = vadd.f32 %v2349_v0, %v2348_v63  ;;  %v2351_v1 = vpop.f32.mrb[22].mxu0  ;;  %v1447_v7 = vrot.slane %v1446_v3, 4 }
 0x2b6   : > { %v2352_v2 = vpop.f32.mrb[23].mxu0 }
 0x2b7   : > { %v3142_v60 = vadd.f32 %v2438_v35, %v2350_v54  ;;  %v2353_v4 = vadd.f32 %v2352_v2, %v2351_v1  ;;  %v1448_v30 = vadd.f32 %v1447_v7, %v1446_v3 }
 0x2b9   : > { %v3144_v6 = vadd.f32 %v2439_v38, %v2353_v4  ;;  %v1449_v23 = vrot.slane %v1448_v30, 2 }
 0x2bb   : > { %v1453_v8 = vadd.f32 %v3144_v6, %v3142_v60  ;;  %v2354_v9 = vpop.f32.mrb[24].mxu0  ;;  %v1450_v25 = vadd.f32 %v1449_v23, %v1448_v30 }
 0x2bc   : > { %v2355_v22 = vpop.f32.mrb[25].mxu0 }
 0x2bd   : > { %v1454_v10 = vrot.slane %v1453_v8, 4  ;;  %v2356_v11 = vadd.f32 %v2355_v22, %v2354_v9  ;;  %v2357_v12 = vpop.f32.mrb[26].mxu0  ;;  %v1451_v37 = vrot.slane %v1450_v25, 1 }
 0x2be   : > { %v2358_v13 = vpop.f32.mrb[27].mxu0 }
 0x2bf   : > { %v1455_v16 = vadd.f32 %v1454_v10, %v1453_v8  ;;  %v3148_v17 = vadd.f32 %v2356_v11, %v1431_v45  ;;  %v2359_v18 = vadd.f32 %v2358_v13, %v2357_v12  ;;  %v1452_v46 = vadd.f32 %v1451_v37, %v1450_v25 }
 0x2c1   : > { %v1456_v20 = vrot.slane %v1455_v16, 2  ;;  %v3150_v21 = vadd.f32 %v2359_v18, %v1434_v40  ;;  %v1475_v63 = vmul.f32 0.0625, %v1452_v46  ;;  %v2559_v18 = vld [vmem:[%s3338_s9 + $0x38] sm:$0xff]  }
 0x2c3   : > { %v1460_v48 = vadd.f32 %v3150_v21, %v3148_v17  ;;  %v2360_v47 = vpop.f32.mrb[28].mxu0  ;;  %v1457_v5 = vadd.f32 %v1456_v20, %v1455_v16  ;;  %v1479_v2 = vpack.c.bf16 %v1475_v63, %v1475_v63  ;;  %v2558_v16 = vld [vmem:[%s3338_s9 + $0x30] sm:$0xff]   ;;  %v2203_v20 = vld [vmem:[%s3337_s8] ss:$0 sm:$0xff] }
 0x2c4   : > { %v2361_v62 = vpop.f32.mrb[29].mxu0  ;;  %2477 = vmatpush3.bf16.msra.mxu1 %v2558_v16 }
 0x2c5   : > { %v1461_v14 = vrot.slane %v1460_v48, 4  ;;  %v2362_v15 = vadd.f32 %v2361_v62, %v2360_v47  ;;  %v2363_v19 = vpop.f32.mrb[30].mxu0  ;;  %v1458_v33 = vrot.slane %v1457_v5, 1  ;;  %v1510_v9 = vunpack.c.l.b16 %v1479_v2  ;;  %2478 = vmatprep.subr.bf16.mxu1 %v2573_v61  ;;  %v2212_v61 = vld [vmem:[%s3339_s10] ss:$0 sm:$0xff] }
 0x2c6   : > { %v2364_v24 = vpop.f32.mrb[31].mxu0 }
 0x2c7   : > { %v1462_v28 = vadd.f32 %v1461_v14, %v1460_v48  ;;  %v3154_v29 = vadd.f32 %v2442_v43, %v2362_v15  ;;  %v2365_v57 = vadd.f32 %v2364_v24, %v2363_v19  ;;  %v1459_v41 = vadd.f32 %v1458_v33, %v1457_v5 }
 0x2c8   : > { %2479 = vmatpush3.bf16.msra.mxu1 %v2559_v18 }
 0x2c9   : > { %v1463_v34 = vrot.slane %v1462_v28, 2  ;;  %v3156_v35 = vadd.f32 %v2443_v52, %v2365_v57  ;;  %v1476_v40 = vmul.f32 0.0625, %v1459_v41 }
 0x2cb   : > { %v1464_v38 = vadd.f32 %v1463_v34, %v1462_v28  ;;  %v1467_v39 = vadd.f32 %v3156_v35, %v3154_v29  ;;  %v1480_v54 = vpack.c.bf16 %v1476_v40, %v1476_v40 }
 0x2cd   : > { %v1465_v44 = vrot.slane %v1464_v38, 1  ;;  %v1468_v45 = vrot.slane %v1467_v39, 4  ;;  %v1511_v4 = vunpack.c.l.b16 %v1480_v54 }
 0x2cf   : > { %v1466_v49 = vadd.f32 %v1465_v44, %v1464_v38  ;;  %v1469_v53 = vadd.f32 %v1468_v45, %v1467_v39  ;;  %v1515_v10 = vsel %vm1514_vm14, %v1511_v4, %v1510_v9  ;;  %v2575_v38 = vmov 1966171168  }
 0x2d0   : > { %v1731_v39 = vunpack.c.l.s4 %v2575_v38 }
 0x2d1   : > { %v1470_v55 = vrot.slane %v1469_v53, 2  ;;  %v1477_v43 = vmul.f32 0.0625, %v1466_v49  ;;  %v1756_v49 = vsub.s32 0, %v2809_v36 }
 0x2d2   : > { %v1732_v41 = vunpack.c.0.s8 %v1731_v39 }
 0x2d3   : > { %v1471_v0 = vadd.f32 %v1470_v55, %v1469_v53  ;;  %v1481_v52 = vpack.c.bf16 %v1477_v43, %v1477_v43 }
 0x2d4   : > { %v1735_v44 = vsub.s32 %v1732_v41, %v2809_v36 }
 0x2d5   : > { %v1472_v1 = vrot.slane %v1471_v0, 1  ;;  %v1512_v8 = vunpack.c.l.b16 %v1481_v52 }
 0x2d7   : > { %v1473_v3 = vadd.f32 %v1472_v1, %v1471_v0  ;;  %v1517_v12 = vsel %vm1516_vm15, %v1512_v8, %v1515_v10 }
 0x2d9   : > { %v1478_v7 = vmul.f32 0.0625, %v1473_v3 }
 0x2db   : > { %v1482_v22 = vpack.c.bf16 %v1478_v7, %v1478_v7 }
 0x2dd   : > { %v1513_v11 = vunpack.c.l.b16 %v1482_v22 }
 0x2df   : > { %v1519_v13 = vsel %vm1518_vm0, %v1513_v11, %v1517_v12 }
 0x2e0   : > { %v1520_v30 = vpack.c.b16 %v1519_v13, %v1519_v13 }
 0x2e2   : > { %2461 = vmatmul.mubr.bf16.vlgmr.msra.gmra.mrb[32].mxu0 %v1520_v30 }
 0x3b5   : > { %v1604_v23 = vpop.f32.mrb[32].mxu0 }
 0x3b6   : > { %v1605_v48 = vadd.f32 %v2203_v20, %v1604_v23  ;;  %v2462_v47 = vpop.f32.mrb[33].mxu0 }
 0x3b7   : > { %v1607_v62 = vpop.f32.mrb[34].mxu0 }
 0x3b8   : > { %v1610_v5 = vmax.f32 %v1605_v48, 0.0  ;;  %v2463_v14 = vpop.f32.mrb[35].mxu0 }
 0x3ba   : > { %v1611_v15 = vpack.c.bf16 %v1610_v5, %v1610_v5 }
 0x3bc   : > { %2481 = vmatmul.mubr.bf16.vlgmr.msra.gmra.mrb[16].mxu1 %v1611_v15 }
 0x48f   : > { %v1717_v19 = vpop.f32.mrb[16].mxu1 }
 0x490   : > { %v1718_v24 = vadd.f32 %v2212_v61, %v1717_v19  ;;  %v2482_v25 = vpop.f32.mrb[17].mxu1 }
 0x491   : > { %v1720_v28 = vpop.f32.mrb[18].mxu1 }
 0x492   : > { %v2221_v57 = vmul.f32 -1.442695, %v1718_v24  ;;  %v2483_v33 = vpop.f32.mrb[19].mxu1 }
 0x494   : > { %2560 = vpow2.f32 %v2221_v57 }
 0x49e   : > { %v2561_v34 = vpop.eup %2560 }
 0x49f   : > { %v1726_v37 = vadd.f32 1.0, %v2561_v34 }
 0x4a1   : > { %2562 = vrcp.f32 %v1726_v37 }
 0x4ab   : > { %v2563_v45 = vpop.eup %2562 }
 0x4ac   : > { %v1736_v46 = vrot.slane %v2563_v45, %v1735_v44 }
 0x4ae   : > { %v1744_v53 = vrot.slane %v1736_v46, %v1735_v44  ;;  %v1737_v40 = vcombine.high %v1736_v46, %v1736_v46 }
 0x4b0   : > { %v1757_v55 = vrot.slane %v1744_v53, %v1756_v49  ;;  %v1751_v43 = vrot.slane %v1737_v40, %v1735_v44  ;;  %v1752_v8 = vcombine.high %v1744_v53, %v1744_v53 }
 0x4b2   : > { %v1774_v63 = vmul.f32 %v1757_v55, %v3136_v42  ;;  %v1761_v0 = vrot.slane %v1751_v43, %v1756_v49  ;;  %v1753_v54 = vcombine.high %v1751_v43, %v1751_v43  ;;  %v1775_v2 = vmul.f32 %v1757_v55, %v3138_v56 }
 0x4b4   : > { %v1782_v1 = vadd.f32 %v1774_v63, %v2798_v27  ;;  %v1776_v52 = vmul.f32 %v1761_v0, %v3142_v60  ;;  %v1769_v3 = vrot.slane %v1753_v54, %v1756_v49  ;;  %v1777_v36 = vmul.f32 %v1761_v0, %v3144_v6 }
 0x4b5   : > { %v1783_v7 = vadd.f32 %v1775_v2, %v2803_v32  ;;  %v1765_v27 = vrot.slane %v1752_v8, %v1756_v49 }
 0x4b6   : > { %1790 = vxpose.xlu0.b32.start [1/2] (short) %v1782_v1, 128  ;;  %v1784_v4 = vadd.f32 %v1776_v52, %v2834_v51  ;;  %v1785_v42 = vadd.f32 %v1777_v36, %v2843_v59  ;;  %v1780_v56 = vmul.f32 %v1769_v3, %v3154_v29  ;;  %v1781_v32 = vmul.f32 %v1769_v3, %v3156_v35 }
 0x4b7   : > { %v1778_v60 = vmul.f32 %v1765_v27, %v3148_v17  ;;  %v1779_v51 = vmul.f32 %v1765_v27, %v3150_v21 }
 0x4b8   : > { %1839 = vxpose.xlu1.b32.start [1/2] (short) %v1784_v4, 128  ;;  %v1788_v6 = vadd.f32 %v1780_v56, %v2796_v26  ;;  %v1789_v22 = vadd.f32 %v1781_v32, %v2801_v31 }
 0x4b9   : > { %v1786_v9 = vadd.f32 %v1778_v60, %v2832_v50  ;;  %v1787_v59 = vadd.f32 %v1779_v51, %v2841_v58 }
 0x4ba   : > { %1791 = vxpose.xlu0.b32.end [2/2] (short) %v1783_v7, 128 }
 0x4bc   : > { %1840 = vxpose.xlu1.b32.end [2/2] (short) %v1785_v42, 128 }
 0x4f3   : > { %1888 = vxpose.xlu0.b32.start [1/2] (short) %v1786_v9, 128 }
 0x4f5   : > { %1937 = vxpose.xlu1.b32.start [1/2] (short) %v1788_v6, 128 }
 0x4f7   : > { %1889 = vxpose.xlu0.b32.end [2/2] (short) %v1787_v59, 128 }
 0x4f9   : > { %1938 = vxpose.xlu1.b32.end [2/2] (short) %v1789_v22, 128 }
 0x536   : > { %v1806_v26 = vpop.trf.xlu0 }
 0x537   : > { %1823 = vst.msk [vmem:[%s3196_s23] sm:$0xff] %vm1822_vm1, %v1806_v26 }
 0x538   : > { %v1855_v31 = vpop.trf.xlu1 }
 0x539   : > { %2222 = vst.msk [vmem:[%s3196_s23 + $0x80] sm:$0xff] %vm1822_vm1, %v1855_v31 }
 0x53a   : > { %v1807_v50 = vpop.trf.xlu0 }
 0x53b   : > { %1824 = vst.msk [vmem:[%s3196_s23 + $0x8] sm:$0xff] %vm1822_vm1, %v1807_v50 }
 0x53c   : > { %v1856_v58 = vpop.trf.xlu1 }
 0x53d   : > { %2223 = vst.msk [vmem:[%s3196_s23 + $0x88] sm:$0xff] %vm1822_vm1, %v1856_v58 }
 0x53e   : > { %v1808_v17 = vpop.trf.xlu0 }
 0x53f   : > { %1825 = vst.msk [vmem:[%s3196_s23 + $0x10] sm:$0xff] %vm1822_vm1, %v1808_v17 }
 0x540   : > { %v1857_v21 = vpop.trf.xlu1 }
 0x541   : > { %2224 = vst.msk [vmem:[%s3196_s23 + $0x90] sm:$0xff] %vm1822_vm1, %v1857_v21 }
 0x542   : > { %v1809_v29 = vpop.trf.xlu0 }
 0x543   : > { %1826 = vst.msk [vmem:[%s3196_s23 + $0x18] sm:$0xff] %vm1822_vm1, %v1809_v29 }
 0x544   : > { %v1858_v35 = vpop.trf.xlu1 }
 0x545   : > { %2225 = vst.msk [vmem:[%s3196_s23 + $0x98] sm:$0xff] %vm1822_vm1, %v1858_v35 }
 0x546   : > { %v1810_v10 = vpop.trf.xlu0 }
 0x547   : > { %1827 = vst.msk [vmem:[%s3196_s23 + $0x20] sm:$0xff] %vm1822_vm1, %v1810_v10 }
 0x548   : > { %v1859_v11 = vpop.trf.xlu1 }
 0x549   : > { %2226 = vst.msk [vmem:[%s3196_s23 + $0xa0] sm:$0xff] %vm1822_vm1, %v1859_v11 }
 0x54a   : > { %v1811_v12 = vpop.trf.xlu0 }
 0x54b   : > { %1828 = vst.msk [vmem:[%s3196_s23 + $0x28] sm:$0xff] %vm1822_vm1, %v1811_v12 }
 0x54c   : > { %v1860_v13 = vpop.trf.xlu1 }
 0x54d   : > { %2227 = vst.msk [vmem:[%s3196_s23 + $0xa8] sm:$0xff] %vm1822_vm1, %v1860_v13 }
 0x54e   : > { %v1812_v30 = vpop.trf.xlu0 }
 0x54f   : > { %1829 = vst.msk [vmem:[%s3196_s23 + $0x30] sm:$0xff] %vm1822_vm1, %v1812_v30 }
 0x550   : > { %v1861_v16 = vpop.trf.xlu1 }
 0x551   : > { %2228 = vst.msk [vmem:[%s3196_s23 + $0xb0] sm:$0xff] %vm1822_vm1, %v1861_v16 }
 0x552   : > { %v1813_v18 = vpop.trf.xlu0 }
 0x553   : > { %1830 = vst.msk [vmem:[%s3196_s23 + $0x38] sm:$0xff] %vm1822_vm1, %v1813_v18 }
 0x554   : > { %v1862_v20 = vpop.trf.xlu1 }
 0x555   : > { %2229 = vst.msk [vmem:[%s3196_s23 + $0xb8] sm:$0xff] %vm1822_vm1, %v1862_v20 }
 0x556   : > { %v1814_v23 = vpop.trf.xlu0 }
 0x557   : > { %1831 = vst.msk [vmem:[%s3196_s23 + $0x40] sm:$0xff] %vm1822_vm1, %v1814_v23 }
 0x558   : > { %v1863_v48 = vpop.trf.xlu1 }
 0x559   : > { %2230 = vst.msk [vmem:[%s3196_s23 + $0xc0] sm:$0xff] %vm1822_vm1, %v1863_v48 }
 0x55a   : > { %v1815_v47 = vpop.trf.xlu0 }
 0x55b   : > { %1832 = vst.msk [vmem:[%s3196_s23 + $0x48] sm:$0xff] %vm1822_vm1, %v1815_v47 }
 0x55c   : > { %v1864_v62 = vpop.trf.xlu1 }
 0x55d   : > { %2231 = vst.msk [vmem:[%s3196_s23 + $0xc8] sm:$0xff] %vm1822_vm1, %v1864_v62 }
 0x55e   : > { %v1816_v5 = vpop.trf.xlu0 }
 0x55f   : > { %1833 = vst.msk [vmem:[%s3196_s23 + $0x50] sm:$0xff] %vm1822_vm1, %v1816_v5 }
 0x560   : > { %v1865_v14 = vpop.trf.xlu1 }
 0x561   : > { %2232 = vst.msk [vmem:[%s3196_s23 + $0xd0] sm:$0xff] %vm1822_vm1, %v1865_v14 }
 0x562   : > { %v1817_v15 = vpop.trf.xlu0 }
 0x563   : > { %1834 = vst.msk [vmem:[%s3196_s23 + $0x58] sm:$0xff] %vm1822_vm1, %v1817_v15 }
 0x564   : > { %v1866_v61 = vpop.trf.xlu1 }
 0x565   : > { %2233 = vst.msk [vmem:[%s3196_s23 + $0xd8] sm:$0xff] %vm1822_vm1, %v1866_v61 }
 0x566   : > { %v1818_v19 = vpop.trf.xlu0 }
 0x567   : > { %1835 = vst.msk [vmem:[%s3196_s23 + $0x60] sm:$0xff] %vm1822_vm1, %v1818_v19 }
 0x568   : > { %v1867_v24 = vpop.trf.xlu1 }
 0x569   : > { %2234 = vst.msk [vmem:[%s3196_s23 + $0xe0] sm:$0xff] %vm1822_vm1, %v1867_v24 }
 0x56a   : > { %v1819_v25 = vpop.trf.xlu0 }
 0x56b   : > { %1836 = vst.msk [vmem:[%s3196_s23 + $0x68] sm:$0xff] %vm1822_vm1, %v1819_v25 }
 0x56c   : > { %v1868_v28 = vpop.trf.xlu1 }
 0x56d   : > { %2235 = vst.msk [vmem:[%s3196_s23 + $0xe8] sm:$0xff] %vm1822_vm1, %v1868_v28 }
 0x56e   : > { %v1820_v57 = vpop.trf.xlu0 }
 0x56f   : > { %1837 = vst.msk [vmem:[%s3196_s23 + $0x70] sm:$0xff] %vm1822_vm1, %v1820_v57 }
 0x570   : > { %v1869_v33 = vpop.trf.xlu1 }
 0x571   : > { %2236 = vst.msk [vmem:[%s3196_s23 + $0xf0] sm:$0xff] %vm1822_vm1, %v1869_v33 }
 0x572   : > { %v1821_v34 = vpop.trf.xlu0 }
 0x573   : > { %1838 = vst.msk [vmem:[%s3196_s23 + $0x78] sm:$0xff] %vm1822_vm1, %v1821_v34 }
 0x574   : > { %v1870_v37 = vpop.trf.xlu1 }
 0x575   : > { %2237 = vst.msk [vmem:[%s3196_s23 + $0xf8] sm:$0xff] %vm1822_vm1, %v1870_v37 }
 0x576   : > { %v1904_v38 = vpop.trf.xlu0 }
 0x577   : > { %2238 = vst.msk [vmem:[%s3196_s23 + $0x100] sm:$0xff] %vm1822_vm1, %v1904_v38 }
 0x578   : > { %v1953_v39 = vpop.trf.xlu1 }
 0x579   : > { %2254 = vst.msk [vmem:[%s3196_s23 + $0x180] sm:$0xff] %vm1822_vm1, %v1953_v39 }
 0x57a   : > { %v1905_v41 = vpop.trf.xlu0 }
 0x57b   : > { %2239 = vst.msk [vmem:[%s3196_s23 + $0x108] sm:$0xff] %vm1822_vm1, %v1905_v41 }
 0x57c   : > { %v1954_v44 = vpop.trf.xlu1 }
 0x57d   : > { %2255 = vst.msk [vmem:[%s3196_s23 + $0x188] sm:$0xff] %vm1822_vm1, %v1954_v44 }
 0x57e   : > { %v1906_v45 = vpop.trf.xlu0 }
 0x57f   : > { %2240 = vst.msk [vmem:[%s3196_s23 + $0x110] sm:$0xff] %vm1822_vm1, %v1906_v45 }
 0x580   : > { %v1955_v46 = vpop.trf.xlu1 }
 0x581   : > { %2256 = vst.msk [vmem:[%s3196_s23 + $0x190] sm:$0xff] %vm1822_vm1, %v1955_v46 }
 0x582   : > { %v1907_v49 = vpop.trf.xlu0 }
 0x583   : > { %2241 = vst.msk [vmem:[%s3196_s23 + $0x118] sm:$0xff] %vm1822_vm1, %v1907_v49 }
 0x584   : > { %v1956_v53 = vpop.trf.xlu1 }
 0x585   : > { %2257 = vst.msk [vmem:[%s3196_s23 + $0x198] sm:$0xff] %vm1822_vm1, %v1956_v53 }
 0x586   : > { %v1908_v40 = vpop.trf.xlu0 }
 0x587   : > { %2242 = vst.msk [vmem:[%s3196_s23 + $0x120] sm:$0xff] %vm1822_vm1, %v1908_v40 }
 0x588   : > { %v1957_v55 = vpop.trf.xlu1 }
 0x589   : > { %2258 = vst.msk [vmem:[%s3196_s23 + $0x1a0] sm:$0xff] %vm1822_vm1, %v1957_v55 }
 0x58a   : > { %v1909_v43 = vpop.trf.xlu0 }
 0x58b   : > { %2243 = vst.msk [vmem:[%s3196_s23 + $0x128] sm:$0xff] %vm1822_vm1, %v1909_v43 }
 0x58c   : > { %v1958_v63 = vpop.trf.xlu1 }
 0x58d   : > { %2259 = vst.msk [vmem:[%s3196_s23 + $0x1a8] sm:$0xff] %vm1822_vm1, %v1958_v63 }
 0x58e   : > { %v1910_v0 = vpop.trf.xlu0 }
 0x58f   : > { %2244 = vst.msk [vmem:[%s3196_s23 + $0x130] sm:$0xff] %vm1822_vm1, %v1910_v0 }
 0x590   : > { %v1959_v54 = vpop.trf.xlu1 }
 0x591   : > { %2260 = vst.msk [vmem:[%s3196_s23 + $0x1b0] sm:$0xff] %vm1822_vm1, %v1959_v54 }
 0x592   : > { %v1911_v1 = vpop.trf.xlu0 }
 0x593   : > { %2245 = vst.msk [vmem:[%s3196_s23 + $0x138] sm:$0xff] %vm1822_vm1, %v1911_v1 }
 0x594   : > { %v1960_v52 = vpop.trf.xlu1 }
 0x595   : > { %2261 = vst.msk [vmem:[%s3196_s23 + $0x1b8] sm:$0xff] %vm1822_vm1, %v1960_v52 }
 0x596   : > { %v1912_v2 = vpop.trf.xlu0 }
 0x597   : > { %2246 = vst.msk [vmem:[%s3196_s23 + $0x140] sm:$0xff] %vm1822_vm1, %v1912_v2 }
 0x598   : > { %v1961_v3 = vpop.trf.xlu1 }
 0x599   : > { %2262 = vst.msk [vmem:[%s3196_s23 + $0x1c0] sm:$0xff] %vm1822_vm1, %v1961_v3 }
 0x59a   : > { %v1913_v4 = vpop.trf.xlu0 }
 0x59b   : > { %2247 = vst.msk [vmem:[%s3196_s23 + $0x148] sm:$0xff] %vm1822_vm1, %v1913_v4 }
 0x59c   : > { %v1962_v36 = vpop.trf.xlu1 }
 0x59d   : > { %2263 = vst.msk [vmem:[%s3196_s23 + $0x1c8] sm:$0xff] %vm1822_vm1, %v1962_v36 }
 0x59e   : > { %v1914_v7 = vpop.trf.xlu0 }
 0x59f   : > { %2248 = vst.msk [vmem:[%s3196_s23 + $0x150] sm:$0xff] %vm1822_vm1, %v1914_v7 }
 0x5a0   : > { %v1963_v42 = vpop.trf.xlu1 }
 0x5a1   : > { %2264 = vst.msk [vmem:[%s3196_s23 + $0x1d0] sm:$0xff] %vm1822_vm1, %v1963_v42 }
 0x5a2   : > { %v1915_v8 = vpop.trf.xlu0 }
 0x5a3   : > { %2249 = vst.msk [vmem:[%s3196_s23 + $0x158] sm:$0xff] %vm1822_vm1, %v1915_v8 }
 0x5a4   : > { %v1964_v27 = vpop.trf.xlu1 }
 0x5a5   : > { %2265 = vst.msk [vmem:[%s3196_s23 + $0x1d8] sm:$0xff] %vm1822_vm1, %v1964_v27 }
 0x5a6   : > { %v1916_v60 = vpop.trf.xlu0 }
 0x5a7   : > { %2250 = vst.msk [vmem:[%s3196_s23 + $0x160] sm:$0xff] %vm1822_vm1, %v1916_v60 }
 0x5a8   : > { %v1965_v56 = vpop.trf.xlu1 }
 0x5a9   : > { %2266 = vst.msk [vmem:[%s3196_s23 + $0x1e0] sm:$0xff] %vm1822_vm1, %v1965_v56 }
 0x5aa   : > { %v1917_v9 = vpop.trf.xlu0 }
 0x5ab   : > { %2251 = vst.msk [vmem:[%s3196_s23 + $0x168] sm:$0xff] %vm1822_vm1, %v1917_v9 }
 0x5ac   : > { %v1966_v51 = vpop.trf.xlu1 }
 0x5ad   : > { %2267 = vst.msk [vmem:[%s3196_s23 + $0x1e8] sm:$0xff] %vm1822_vm1, %v1966_v51 }
 0x5ae   : > { %v1918_v6 = vpop.trf.xlu0 }
 0x5af   : > { %2252 = vst.msk [vmem:[%s3196_s23 + $0x170] sm:$0xff] %vm1822_vm1, %v1918_v6 }
 0x5b0   : > { %v1967_v32 = vpop.trf.xlu1 }
 0x5b1   : > { %2268 = vst.msk [vmem:[%s3196_s23 + $0x1f0] sm:$0xff] %vm1822_vm1, %v1967_v32 }
 0x5b2   : > { %v1919_v59 = vpop.trf.xlu0 }
 0x5b3   : > { %2253 = vst.msk [vmem:[%s3196_s23 + $0x178] sm:$0xff] %vm1822_vm1, %v1919_v59 }
 0x5b4   : > { %v1968_v22 = vpop.trf.xlu1 }
 0x5b5   : > { %2269 = vst.msk [vmem:[%s3196_s23 + $0x1f8] sm:$0xff] %vm1822_vm1, %v1968_v22 }
 0x5b6 PF: > { %s21_s17 = sadd.s32 1, %s2570_s17  }
 0x5b7   : > { %p18_p4 = scmp.ge.s32.totalorder %s21_s17, 4  }
 0x5b9   :  { %20 = sbr.rel (!%p18_p4) target bundleno = 1 (0x1), region = 100 }

</bundles_post_ra>
